<compile_context>
chip_gen: v7x
topology: tpu7x:2x2x1
jax: 0.10.0
libtpu: 0.0.40
codegen_flags: <defaults>
</compile_context>

<pallas_src>
import math

import jax
import jax.numpy as jnp
from jax.experimental import pallas as pl
from jax.experimental.pallas import tpu as pltpu


def _round_up(v, m):
    return (v + m - 1) // m * m


# --------------------------------------------------------------------------
# Kernels
# --------------------------------------------------------------------------
def rgru_step_kernel(x_ref, h_ref, wx_ref, wh_ref, out_ref):
    """One batch-tile of a single RGRU (diag=True) step.

    x_ref  : (TB, Dp)      input tile (matmul dtype), zero-padded cols
    h_ref  : (TB, Hp)      previous hidden, f32, pads = 1.0
    wx_ref : (Dp, 3*Hp)    |Wx|, gate-major, lane-aligned, zero-padded
    wh_ref : (Hp, 3*Hp)    |Wh| * |bias| (bias folded per gate column)
    out_ref: (TB, Hp)      new hidden (aliased onto h's HBM buffer)
    """
    Hp = out_ref.shape[1]
    h = h_ref[...]

    # Two back-to-back MXU dots, f32 accumulate.
    gx = jnp.dot(x_ref[...], wx_ref[...], preferred_element_type=jnp.float32)
    gh = jnp.dot(h.astype(wh_ref.dtype), wh_ref[...],
                 preferred_element_type=jnp.float32)

    # Lane-aligned gate slabs (offsets are multiples of 128 -> free views).
    i_r, i_i, i_n = gx[:, :Hp], gx[:, Hp:2 * Hp], gx[:, 2 * Hp:]
    hb_r, hb_i, hb_n = gh[:, :Hp], gh[:, Hp:2 * Hp], gh[:, 2 * Hp:]

    # diag=True math, algebraically simplified (pre-activations are > 0):
    #   sigmoid(|b| * exp(log a + log c)) == sigmoid(|b| * a * c)
    # with |b| already folded into the Wh columns (hb_* = |b_*| * h_*).
    resetgate = jax.nn.sigmoid(i_r * hb_r)
    inputgate = jax.nn.sigmoid(i_i * hb_i)
    newgate = jax.nn.softplus(i_n * (resetgate * hb_n))

    log_new = jnp.log(newgate)
    hy = jnp.exp(log_new + inputgate * (jnp.log(h) - log_new))

    out_ref[...] = hy.astype(out_ref.dtype)


def rgru_seq_kernel(x_ref, h0_ref, wx_ref, wh_ref, out_ref, h_sc):
    """Fused time loop: grid = (batch tiles, T), hidden carried in VMEM scratch.

    x_ref  : (1, TB, Dp)   x at timestep t
    h0_ref : (TB, Hp)      initial hidden (used only at t == 0)
    wx_ref : (Dp, 3*Hp)    resident weights
    wh_ref : (Hp, 3*Hp)    resident weights (bias folded)
    out_ref: (1, TB, Hp)   hidden after step t
    h_sc   : (TB, Hp) f32  carried hidden state
    """
    Hp = h_sc.shape[1]
    t = pl.program_id(1)

    @pl.when(t == 0)
    def _():
        h_sc[...] = h0_ref[...]

    h = h_sc[...]
    gx = jnp.dot(x_ref[0], wx_ref[...], preferred_element_type=jnp.float32)
    gh = jnp.dot(h.astype(wh_ref.dtype), wh_ref[...],
                 preferred_element_type=jnp.float32)

    i_r, i_i, i_n = gx[:, :Hp], gx[:, Hp:2 * Hp], gx[:, 2 * Hp:]
    hb_r, hb_i, hb_n = gh[:, :Hp], gh[:, Hp:2 * Hp], gh[:, 2 * Hp:]

    resetgate = jax.nn.sigmoid(i_r * hb_r)
    inputgate = jax.nn.sigmoid(i_i * hb_i)
    newgate = jax.nn.softplus(i_n * (resetgate * hb_n))

    log_new = jnp.log(newgate)
    hy = jnp.exp(log_new + inputgate * (jnp.log(h) - log_new))

    h_sc[...] = hy
    out_ref[0] = hy.astype(out_ref.dtype)


# --------------------------------------------------------------------------
# Parameter preparation (done ONCE, not per step)
# --------------------------------------------------------------------------
def prepare_rgru_params(wx, wh, bias, hidden_size, matmul_dtype=jnp.float32):
    """Precompute kernel-ready parameters.

    Returns:
      wx_p : (Dp, 3*Hp)  |Wx|, gate-major, lane-aligned, zero-padded
      wh_p : (Hp, 3*Hp)  |Wh| with |bias| folded into each gate's columns
    """
    D = wx.shape[0]
    H = hidden_size
    assert wx.shape == (D, 3 * H)
    assert wh.shape == (H, 3 * H)
    assert bias.shape == (3 * H,)

    Hp = _round_up(H, 128)
    Dp = _round_up(D, 8)

    wx_a = jnp.abs(wx).astype(jnp.float32)
    wh_a = jnp.abs(wh).astype(jnp.float32)
    b_a = jnp.abs(bias).astype(jnp.float32)

    # Fold |bias| into the Wh gate columns:  b_g * (h @ |Wh_g|) == h @ (|Wh_g| * b_g)
    wh_a = wh_a * b_a[None, :]

    wx_p = jnp.pad(wx_a.reshape(D, 3, H),
                   ((0, Dp - D), (0, 0), (0, Hp - H))).reshape(Dp, 3 * Hp)
    wh_p = jnp.pad(wh_a.reshape(H, 3, H),
                   ((0, Hp - H), (0, 0), (0, Hp - H))).reshape(Hp, 3 * Hp)

    return wx_p.astype(matmul_dtype), wh_p.astype(matmul_dtype)


# --------------------------------------------------------------------------
# Wrappers
# --------------------------------------------------------------------------
def _batch_tiling(B, batch_tile):
    Bp8 = _round_up(max(B, 1), 8)
    TB = min(batch_tile, Bp8)
    # >= 2 batch grid steps whenever possible so both v7x TensorCores get work.
    if Bp8 >= 16:
        TB = min(TB, _round_up(Bp8 // 2, 8))
    TB = _round_up(TB, 8)
    Bp = _round_up(B, TB)
    return TB, Bp


def _vmem_limit_bytes(weight_bytes, tile_bytes, extra_bytes):
    needed = weight_bytes + 2 * tile_bytes + extra_bytes + (4 << 20)
    return int(min(96 << 20, max(24 << 20, needed)))


def _const_spec(block_shape, index_map, buffered):
    if buffered:
        return pl.BlockSpec(block_shape, index_map,
                            pipeline_mode=pl.Buffered(1))
    return pl.BlockSpec(block_shape, index_map)


def rgru_cell_forward(x, hidden, wx_p, wh_p, *, hidden_size,
                      matmul_dtype=jnp.float32, batch_tile=64):
    """One RGRUCell (diag=True) step.  x: (B, D), hidden: (B, H) -> (B, H)."""
    B, D = x.shape
    H = hidden_size
    assert hidden.shape == (B, H)
    Dp, W3 = wx_p.shape
    Hp = wh_p.shape[0]
    assert W3 == 3 * Hp and wh_p.shape == (Hp, 3 * Hp)

    TB, Bp = _batch_tiling(B, batch_tile)

    # Single HBM copy of x and of hidden each.  Hidden stays f32 (kernel takes
    # log(h)); pads are 1.0 so logs stay finite (zero weight pads kill their
    # matmul contribution anyway).
    x_p = jnp.pad(x.astype(jnp.float32), ((0, Bp - B), (0, Dp - D)),
                  constant_values=1.0).astype(matmul_dtype)
    h_pad = jnp.pad(hidden.astype(jnp.float32), ((0, Bp - B), (0, Hp - H)),
                    constant_values=1.0)

    dsize = jnp.dtype(matmul_dtype).itemsize
    weight_bytes = (Dp + Hp) * 3 * Hp * dsize
    tile_bytes = TB * Dp * dsize + 2 * TB * Hp * 4          # x, h, out tiles
    gate_scratch = 8 * TB * 3 * Hp * 4                      # gate temps / spills
    vmem_limit = _vmem_limit_bytes(weight_bytes, tile_bytes, gate_scratch)

    cost = pl.CostEstimate(
        flops=2 * Bp * (Dp + Hp) * 3 * Hp,
        transcendentals=6 * Bp * Hp,
        bytes_accessed=int(Bp * Dp * dsize + Bp * Hp * 4
                           + weight_bytes + Bp * Hp * 4))

    def _call(buffered):
        out = pl.pallas_call(
            rgru_step_kernel,
            out_shape=jax.ShapeDtypeStruct((Bp, Hp), jnp.float32),
            grid=(Bp // TB,),
            in_specs=[
                pl.BlockSpec((TB, Dp), lambda i: (i, 0)),          # x tile
                pl.BlockSpec((TB, Hp), lambda i: (i, 0)),          # prev hidden
                _const_spec((Dp, 3 * Hp), lambda i: (0, 0), buffered),  # |Wx|
                _const_spec((Hp, 3 * Hp), lambda i: (0, 0), buffered),  # |Wh|*|b|
            ],
            out_specs=pl.BlockSpec((TB, Hp), lambda i: (i, 0)),
            # New hidden overwrites the old hidden's (padded) HBM buffer.
            input_output_aliases={1: 0},
            compiler_params=pltpu.CompilerParams(
                dimension_semantics=("parallel",),
                vmem_limit_bytes=vmem_limit),
            cost_estimate=cost,
        )(x_p, h_pad, wx_p, wh_p)
        return jax.block_until_ready(out)

    try:
        out = _call(True)
    except Exception:
        # Fallback if single-buffered (Buffered(1)) resident weights are not
        # supported by this jax/Mosaic version.
        out = _call(False)

    return out[:B, :H]


def rgru_cell_sequence(x_seq, hidden, wx_p, wh_p, *, hidden_size,
                       matmul_dtype=jnp.float32, batch_tile=64):
    """Fused scan: runs T RGRU steps inside one kernel.

    x_seq: (T, B, D), hidden: (B, H) -> (T, B, H) hidden state after each step.
    Weights are DMA'd once and stay VMEM-resident; the hidden state is carried
    in a VMEM scratch accumulator across the innermost ("arbitrary") T axis.
    """
    T, B, D = x_seq.shape
    H = hidden_size
    assert hidden.shape == (B, H)
    Dp = wx_p.shape[0]
    Hp = wh_p.shape[0]

    TB, Bp = _batch_tiling(B, batch_tile)

    x_p = jnp.pad(x_seq.astype(jnp.float32),
                  ((0, 0), (0, Bp - B), (0, Dp - D)),
                  constant_values=1.0).astype(matmul_dtype)
    h0_pad = jnp.pad(hidden.astype(jnp.float32), ((0, Bp - B), (0, Hp - H)),
                     constant_values=1.0)

    dsize = jnp.dtype(matmul_dtype).itemsize
    weight_bytes = (Dp + Hp) * 3 * Hp * dsize
    tile_bytes = TB * Dp * dsize + 2 * TB * Hp * 4
    extra = 8 * TB * 3 * Hp * 4 + TB * Hp * 4               # gates + carried h
    vmem_limit = _vmem_limit_bytes(weight_bytes, tile_bytes, extra)

    cost = pl.CostEstimate(
        flops=2 * T * Bp * (Dp + Hp) * 3 * Hp,
        transcendentals=6 * T * Bp * Hp,
        bytes_accessed=int(T * Bp * Dp * dsize + Bp * Hp * 4
                           + weight_bytes + T * Bp * Hp * 4))

    def _call(buffered):
        out = pl.pallas_call(
            rgru_seq_kernel,
            out_shape=jax.ShapeDtypeStruct((T, Bp, Hp), jnp.float32),
            grid=(Bp // TB, T),
            in_specs=[
                pl.BlockSpec((1, TB, Dp), lambda i, t: (t, i, 0)),     # x_t
                pl.BlockSpec((TB, Hp), lambda i, t: (i, 0)),           # h0
                _const_spec((Dp, 3 * Hp), lambda i, t: (0, 0), buffered),
                _const_spec((Hp, 3 * Hp), lambda i, t: (0, 0), buffered),
            ],
            out_specs=pl.BlockSpec((1, TB, Hp), lambda i, t: (t, i, 0)),
            scratch_shapes=[pltpu.VMEM((TB, Hp), jnp.float32)],
            compiler_params=pltpu.CompilerParams(
                dimension_semantics=("parallel", "arbitrary"),
                vmem_limit_bytes=vmem_limit),
            cost_estimate=cost,
        )(x_p, h0_pad, wx_p, wh_p)
        return jax.block_until_ready(out)

    try:
        out = _call(True)
    except Exception:
        out = _call(False)

    return out[:, :B, :H]


# --------------------------------------------------------------------------
# Pure-JAX reference (op-for-op mirror of the PyTorch diag=True forward)
# --------------------------------------------------------------------------
def rgru_reference(x, hidden, wx, wh, bias):
    gate_x = x @ jnp.abs(wx)
    gate_h = hidden @ jnp.abs(wh)
    i_r, i_i, i_n = jnp.split(gate_x, 3, axis=1)
    h_r, h_i, h_n = jnp.split(gate_h, 3, axis=1)
    b_r, b_i, b_n = jnp.split(jnp.abs(bias), 3)
    resetgate = jax.nn.sigmoid(b_r * jnp.exp(jnp.log(i_r) + jnp.log(h_r)))
    inputgate = jax.nn.sigmoid(b_i * jnp.exp(jnp.log(i_i) + jnp.log(h_i)))
    newgate = jax.nn.softplus(
        b_n * jnp.exp(jnp.log(i_n) + jnp.log(resetgate * h_n)))
    return jnp.exp(jnp.log(newgate) * (1.0 - inputgate)
                   + inputgate * jnp.log(hidden))


if __name__ == "__main__":
    B = 16
    T = 8
    input_size = 16
    hidden_size = 32

    key = jax.random.PRNGKey(0)
    k_x, k_xs, k_h, k_wx, k_wh, k_b = jax.random.split(key, 6)

    # reset_parameters(): all params ~ Uniform(-std, std), std = 1/sqrt(H).
    std = 1.0 / math.sqrt(hidden_size)
    wx = jax.random.uniform(k_wx, (input_size, 3 * hidden_size),
                            minval=-std, maxval=std, dtype=jnp.float32)
    wh = jax.random.uniform(k_wh, (hidden_size, 3 * hidden_size),
                            minval=-std, maxval=std, dtype=jnp.float32)
    bias = jax.random.uniform(k_b, (3 * hidden_size,),
                              minval=-std, maxval=std, dtype=jnp.float32)

    # The diag path takes logs of the gate pre-activations, so inputs are
    # positive-valued (as in the paper's intended usage).
    x = jax.random.uniform(k_x, (B, input_size), minval=0.1, maxval=1.0,
                           dtype=jnp.float32)
    x_seq = jax.random.uniform(k_xs, (T, B, input_size), minval=0.1,
                               maxval=1.0, dtype=jnp.float32)
    hidden = jax.random.uniform(k_h, (B, hidden_size), minval=0.1, maxval=1.0,
                                dtype=jnp.float32)

    hy_ref = rgru_reference(x, hidden, wx, wh, bias)

    # --- single step, f32 matmul path (exact) -------------------------------
    wx_p, wh_p = prepare_rgru_params(wx, wh, bias, hidden_size,
                                     matmul_dtype=jnp.float32)
    hy = rgru_cell_forward(x, hidden, wx_p, wh_p, hidden_size=hidden_size,
                           matmul_dtype=jnp.float32)
    jax.block_until_ready(hy)
    assert hy.shape == (B, hidden_size)
    assert jnp.allclose(hy, hy_ref, rtol=1e-3, atol=1e-5), \
        float(jnp.max(jnp.abs(hy - hy_ref)))

    # --- single step, bf16 matmul path (MXU-native on v5e/v6e/v7x) ----------
    wx_b, wh_b = prepare_rgru_params(wx, wh, bias, hidden_size,
                                     matmul_dtype=jnp.bfloat16)
    hy_b = rgru_cell_forward(x, hidden, wx_b, wh_b, hidden_size=hidden_size,
                             matmul_dtype=jnp.bfloat16)
    jax.block_until_ready(hy_b)
    assert jnp.allclose(hy_b, hy_ref, rtol=1e-1, atol=5e-2)

    # --- fused time loop: T steps in one kernel ------------------------------
    hs = rgru_cell_sequence(x_seq, hidden, wx_p, wh_p,
                            hidden_size=hidden_size,
                            matmul_dtype=jnp.float32)
    jax.block_until_ready(hs)
    assert hs.shape == (T, B, hidden_size)
    h_ref = hidden
    for t in range(T):
        h_ref = rgru_reference(x_seq[t], h_ref, wx, wh, bias)
        assert jnp.allclose(hs[t], h_ref, rtol=1e-3, atol=1e-4), \
            (t, float(jnp.max(jnp.abs(hs[t] - h_ref))))

    print("KERNEL_OK")
</pallas_src>

<mosaic_0001>
module attributes {stable_mosaic.version = 11 : i64} {
  func.func @rgru_step_kernel(%arg0: i32, %arg1: memref<8x16xf32, #tpu.memory_space<vmem>>, %arg2: memref<8x128xf32, #tpu.memory_space<vmem>>, %arg3: memref<16x384xf32, #tpu.memory_space<vmem>>, %arg4: memref<128x384xf32, #tpu.memory_space<vmem>>, %arg5: memref<8x128xf32, #tpu.memory_space<vmem>>) attributes {dimension_semantics = [#tpu.dimension_semantics<parallel>], iteration_bounds = array<i64: 2>, scalar_prefetch = 0 : i64, scratch_operands = 0 : i64, tpu.core_type = #tpu.core_type<tc>, window_params = [{transform_indices = @transform_0, window_bounds = array<i64: 8, 16>}, {transform_indices = @transform_1, window_bounds = array<i64: 8, 128>}, {pipeline_mode = #tpu.pipeline_mode<synchronous>, transform_indices = @transform_2, window_bounds = array<i64: 16, 384>}, {pipeline_mode = #tpu.pipeline_mode<synchronous>, transform_indices = @transform_3, window_bounds = array<i64: 128, 384>}, {transform_indices = @transform_4, window_bounds = array<i64: 8, 128>}]} {
    %c0 = arith.constant 0 : index
    %c0_0 = arith.constant 0 : index
    %0 = vector.load %arg2[%c0, %c0_0] : memref<8x128xf32, #tpu.memory_space<vmem>>, vector<8x128xf32>
    %c0_1 = arith.constant 0 : index
    %c0_2 = arith.constant 0 : index
    %1 = vector.load %arg1[%c0_1, %c0_2] : memref<8x16xf32, #tpu.memory_space<vmem>>, vector<8x16xf32>
    %c0_3 = arith.constant 0 : index
    %c0_4 = arith.constant 0 : index
    %2 = vector.load %arg3[%c0_3, %c0_4] : memref<16x384xf32, #tpu.memory_space<vmem>>, vector<16x384xf32>
    %cst = arith.constant dense<0.000000e+00> : vector<8x384xf32>
    %3 = tpu.matmul %1, %2, %cst {dimension_numbers = #tpu.dot_dimension_numbers<[1], [0], [0], [1], [0, 0, 1, 1], [], []>} : vector<8x16xf32>, vector<16x384xf32>, vector<8x384xf32> -> vector<8x384xf32>
    %c0_5 = arith.constant 0 : index
    %c0_6 = arith.constant 0 : index
    %4 = vector.load %arg4[%c0_5, %c0_6] : memref<128x384xf32, #tpu.memory_space<vmem>>, vector<128x384xf32>
    %cst_7 = arith.constant dense<0.000000e+00> : vector<8x384xf32>
    %5 = tpu.matmul %0, %4, %cst_7 {dimension_numbers = #tpu.dot_dimension_numbers<[1], [0], [0], [1], [0, 0, 1, 1], [], []>} : vector<8x128xf32>, vector<128x384xf32>, vector<8x384xf32> -> vector<8x384xf32>
    %6 = vector.extract_strided_slice %3 {offsets = [0, 0], sizes = [8, 128], strides = [1, 1]} : vector<8x384xf32> to vector<8x128xf32>
    %7 = vector.extract_strided_slice %3 {offsets = [0, 128], sizes = [8, 128], strides = [1, 1]} : vector<8x384xf32> to vector<8x128xf32>
    %8 = vector.extract_strided_slice %3 {offsets = [0, 256], sizes = [8, 128], strides = [1, 1]} : vector<8x384xf32> to vector<8x128xf32>
    %9 = vector.extract_strided_slice %5 {offsets = [0, 0], sizes = [8, 128], strides = [1, 1]} : vector<8x384xf32> to vector<8x128xf32>
    %10 = vector.extract_strided_slice %5 {offsets = [0, 128], sizes = [8, 128], strides = [1, 1]} : vector<8x384xf32> to vector<8x128xf32>
    %11 = vector.extract_strided_slice %5 {offsets = [0, 256], sizes = [8, 128], strides = [1, 1]} : vector<8x384xf32> to vector<8x128xf32>
    %12 = arith.mulf %6, %9 : vector<8x128xf32>
    %13 = arith.negf %12 : vector<8x128xf32>
    %14 = math.exp %13 : vector<8x128xf32>
    %cst_8 = arith.constant 1.000000e+00 : f32
    %15 = vector.broadcast %cst_8 : f32 to vector<8x128xf32>
    %16 = arith.addf %15, %14 : vector<8x128xf32>
    %17 = arith.divf %15, %16 : vector<8x128xf32>
    %18 = arith.mulf %7, %10 : vector<8x128xf32>
    %19 = arith.negf %18 : vector<8x128xf32>
    %20 = math.exp %19 : vector<8x128xf32>
    %cst_9 = arith.constant 1.000000e+00 : f32
    %21 = vector.broadcast %cst_9 : f32 to vector<8x128xf32>
    %22 = arith.addf %21, %20 : vector<8x128xf32>
    %23 = arith.divf %21, %22 : vector<8x128xf32>
    %24 = arith.mulf %17, %11 : vector<8x128xf32>
    %25 = arith.mulf %8, %24 : vector<8x128xf32>
    %cst_10 = arith.constant 0.000000e+00 : f32
    %26 = vector.broadcast %cst_10 : f32 to vector<8x128xf32>
    %27 = arith.maximumf %25, %26 : vector<8x128xf32>
    %28 = vector.broadcast %cst_10 : f32 to vector<8x128xf32>
    %29 = arith.subf %25, %28 : vector<8x128xf32>
    %30 = arith.cmpf one, %29, %29 : vector<8x128xf32>
    %31 = vector.broadcast %cst_10 : f32 to vector<8x128xf32>
    %32 = arith.addf %25, %31 : vector<8x128xf32>
    %33 = math.absf %29 : vector<8x128xf32>
    %cst_11 = arith.constant 0.000000e+00 : f32
    %34 = vector.broadcast %cst_11 : f32 to vector<8x128xf32>
    %35 = arith.subf %34, %33 : vector<8x128xf32>
    %36 = math.exp %35 : vector<8x128xf32>
    %37 = math.log1p %36 : vector<8x128xf32>
    %38 = arith.addf %27, %37 : vector<8x128xf32>
    %39 = arith.select %30, %32, %38 : vector<8x128xi1>, vector<8x128xf32>
    %40 = math.log %39 : vector<8x128xf32>
    %41 = math.log %0 : vector<8x128xf32>
    %42 = arith.subf %41, %40 : vector<8x128xf32>
    %43 = arith.mulf %23, %42 : vector<8x128xf32>
    %44 = arith.addf %40, %43 : vector<8x128xf32>
    %45 = math.exp %44 : vector<8x128xf32>
    %c0_12 = arith.constant 0 : index
    %c0_13 = arith.constant 0 : index
    %46 = vector.load %arg5[%c0_12, %c0_13] : memref<8x128xf32, #tpu.memory_space<vmem>>, vector<8x128xf32>
    tpu.vector_store %arg5[%c0_12, %c0_13], %45 {strides = array<i32>} : memref<8x128xf32, #tpu.memory_space<vmem>>, vector<8x128xf32>,
    return
  }
  func.func @transform_0(%arg0: i32) -> (i32, i32) {
    %c0_i32 = arith.constant 0 : i32
    %c0_i32_0 = arith.constant 0 : i32
    return %arg0, %c0_i32 : i32, i32
  }
  func.func @transform_1(%arg0: i32) -> (i32, i32) {
    %c0_i32 = arith.constant 0 : i32
    %c0_i32_0 = arith.constant 0 : i32
    return %arg0, %c0_i32 : i32, i32
  }
  func.func @transform_2(%arg0: i32) -> (i32, i32) {
    %c0_i32 = arith.constant 0 : i32
    %c0_i32_0 = arith.constant 0 : i32
    %c0_i32_1 = arith.constant 0 : i32
    return %c0_i32, %c0_i32_0 : i32, i32
  }
  func.func @transform_3(%arg0: i32) -> (i32, i32) {
    %c0_i32 = arith.constant 0 : i32
    %c0_i32_0 = arith.constant 0 : i32
    %c0_i32_1 = arith.constant 0 : i32
    return %c0_i32, %c0_i32_0 : i32, i32
  }
  func.func @transform_4(%arg0: i32) -> (i32, i32) {
    %c0_i32 = arith.constant 0 : i32
    %c0_i32_0 = arith.constant 0 : i32
    return %arg0, %c0_i32 : i32, i32
  }
}

module attributes {stable_mosaic.version = 11 : i64} {
  func.func @rgru_step_kernel(%arg0: i32, %arg1: memref<8x16xf32, #tpu.memory_space<vmem>>, %arg2: memref<8x128xf32, #tpu.memory_space<vmem>>, %arg3: memref<16x384xf32, #tpu.memory_space<vmem>>, %arg4: memref<128x384xf32, #tpu.memory_space<vmem>>, %arg5: memref<8x128xf32, #tpu.memory_space<vmem>>) attributes {dimension_semantics = [#tpu.dimension_semantics<parallel>], iteration_bounds = array<i64: 2>, scalar_prefetch = 0 : i64, scratch_operands = 0 : i64, tpu.core_type = #tpu.core_type<tc>, window_params = [{transform_indices = @transform_0, window_bounds = array<i64: 8, 16>}, {transform_indices = @transform_1, window_bounds = array<i64: 8, 128>}, {pipeline_mode = #tpu.pipeline_mode<synchronous>, transform_indices = @transform_2, window_bounds = array<i64: 16, 384>}, {pipeline_mode = #tpu.pipeline_mode<synchronous>, transform_indices = @transform_3, window_bounds = array<i64: 128, 384>}, {transform_indices = @transform_4, window_bounds = array<i64: 8, 128>}]} {
    %c0 = arith.constant 0 : index
    %c0_0 = arith.constant 0 : index
    %0 = vector.load %arg2[%c0, %c0_0] : memref<8x128xf32, #tpu.memory_space<vmem>>, vector<8x128xf32>
    %c0_1 = arith.constant 0 : index
    %c0_2 = arith.constant 0 : index
    %1 = vector.load %arg1[%c0_1, %c0_2] : memref<8x16xf32, #tpu.memory_space<vmem>>, vector<8x16xf32>
    %c0_3 = arith.constant 0 : index
    %c0_4 = arith.constant 0 : index
    %2 = vector.load %arg3[%c0_3, %c0_4] : memref<16x384xf32, #tpu.memory_space<vmem>>, vector<16x384xf32>
    %cst = arith.constant dense<0.000000e+00> : vector<8x384xf32>
    %3 = tpu.matmul %1, %2, %cst {dimension_numbers = #tpu.dot_dimension_numbers<[1], [0], [0], [1], [0, 0, 1, 1], [], []>} : vector<8x16xf32>, vector<16x384xf32>, vector<8x384xf32> -> vector<8x384xf32>
    %c0_5 = arith.constant 0 : index
    %c0_6 = arith.constant 0 : index
    %4 = vector.load %arg4[%c0_5, %c0_6] : memref<128x384xf32, #tpu.memory_space<vmem>>, vector<128x384xf32>
    %cst_7 = arith.constant dense<0.000000e+00> : vector<8x384xf32>
    %5 = tpu.matmul %0, %4, %cst_7 {dimension_numbers = #tpu.dot_dimension_numbers<[1], [0], [0], [1], [0, 0, 1, 1], [], []>} : vector<8x128xf32>, vector<128x384xf32>, vector<8x384xf32> -> vector<8x384xf32>
    %6 = vector.extract_strided_slice %3 {offsets = [0, 0], sizes = [8, 128], strides = [1, 1]} : vector<8x384xf32> to vector<8x128xf32>
    %7 = vector.extract_strided_slice %3 {offsets = [0, 128], sizes = [8, 128], strides = [1, 1]} : vector<8x384xf32> to vector<8x128xf32>
    %8 = vector.extract_strided_slice %3 {offsets = [0, 256], sizes = [8, 128], strides = [1, 1]} : vector<8x384xf32> to vector<8x128xf32>
    %9 = vector.extract_strided_slice %5 {offsets = [0, 0], sizes = [8, 128], strides = [1, 1]} : vector<8x384xf32> to vector<8x128xf32>
    %10 = vector.extract_strided_slice %5 {offsets = [0, 128], sizes = [8, 128], strides = [1, 1]} : vector<8x384xf32> to vector<8x128xf32>
    %11 = vector.extract_strided_slice %5 {offsets = [0, 256], sizes = [8, 128], strides = [1, 1]} : vector<8x384xf32> to vector<8x128xf32>
    %12 = arith.mulf %6, %9 : vector<8x128xf32>
    %13 = arith.negf %12 : vector<8x128xf32>
    %14 = math.exp %13 : vector<8x128xf32>
    %cst_8 = arith.constant 1.000000e+00 : f32
    %15 = vector.broadcast %cst_8 : f32 to vector<8x128xf32>
    %16 = arith.addf %15, %14 : vector<8x128xf32>
    %17 = arith.divf %15, %16 : vector<8x128xf32>
    %18 = arith.mulf %7, %10 : vector<8x128xf32>
    %19 = arith.negf %18 : vector<8x128xf32>
    %20 = math.exp %19 : vector<8x128xf32>
    %cst_9 = arith.constant 1.000000e+00 : f32
    %21 = vector.broadcast %cst_9 : f32 to vector<8x128xf32>
    %22 = arith.addf %21, %20 : vector<8x128xf32>
    %23 = arith.divf %21, %22 : vector<8x128xf32>
    %24 = arith.mulf %17, %11 : vector<8x128xf32>
    %25 = arith.mulf %8, %24 : vector<8x128xf32>
    %cst_10 = arith.constant 0.000000e+00 : f32
    %26 = vector.broadcast %cst_10 : f32 to vector<8x128xf32>
    %27 = arith.maximumf %25, %26 : vector<8x128xf32>
    %28 = vector.broadcast %cst_10 : f32 to vector<8x128xf32>
    %29 = arith.subf %25, %28 : vector<8x128xf32>
    %30 = arith.cmpf one, %29, %29 : vector<8x128xf32>
    %31 = vector.broadcast %cst_10 : f32 to vector<8x128xf32>
    %32 = arith.addf %25, %31 : vector<8x128xf32>
    %33 = math.absf %29 : vector<8x128xf32>
    %cst_11 = arith.constant 0.000000e+00 : f32
    %34 = vector.broadcast %cst_11 : f32 to vector<8x128xf32>
    %35 = arith.subf %34, %33 : vector<8x128xf32>
    %36 = math.exp %35 : vector<8x128xf32>
    %37 = math.log1p %36 : vector<8x128xf32>
    %38 = arith.addf %27, %37 : vector<8x128xf32>
    %39 = arith.select %30, %32, %38 : vector<8x128xi1>, vector<8x128xf32>
    %40 = math.log %39 : vector<8x128xf32>
    %41 = math.log %0 : vector<8x128xf32>
    %42 = arith.subf %41, %40 : vector<8x128xf32>
    %43 = arith.mulf %23, %42 : vector<8x128xf32>
    %44 = arith.addf %40, %43 : vector<8x128xf32>
    %45 = math.exp %44 : vector<8x128xf32>
    %c0_12 = arith.constant 0 : index
    %c0_13 = arith.constant 0 : index
    %46 = vector.load %arg5[%c0_12, %c0_13] : memref<8x128xf32, #tpu.memory_space<vmem>>, vector<8x128xf32>
    tpu.vector_store %arg5[%c0_12, %c0_13], %45 {strides = array<i32>} : memref<8x128xf32, #tpu.memory_space<vmem>>, vector<8x128xf32>,
    return
  }
  func.func @transform_0(%arg0: i32) -> (i32, i32) {
    %c0_i32 = arith.constant 0 : i32
    %c0_i32_0 = arith.constant 0 : i32
    return %arg0, %c0_i32 : i32, i32
  }
  func.func @transform_1(%arg0: i32) -> (i32, i32) {
    %c0_i32 = arith.constant 0 : i32
    %c0_i32_0 = arith.constant 0 : i32
    return %arg0, %c0_i32 : i32, i32
  }
  func.func @transform_2(%arg0: i32) -> (i32, i32) {
    %c0_i32 = arith.constant 0 : i32
    %c0_i32_0 = arith.constant 0 : i32
    %c0_i32_1 = arith.constant 0 : i32
    return %c0_i32, %c0_i32_0 : i32, i32
  }
  func.func @transform_3(%arg0: i32) -> (i32, i32) {
    %c0_i32 = arith.constant 0 : i32
    %c0_i32_0 = arith.constant 0 : i32
    %c0_i32_1 = arith.constant 0 : i32
    return %c0_i32, %c0_i32_0 : i32, i32
  }
  func.func @transform_4(%arg0: i32) -> (i32, i32) {
    %c0_i32 = arith.constant 0 : i32
    %c0_i32_0 = arith.constant 0 : i32
    return %arg0, %c0_i32 : i32, i32
  }
}

</mosaic_0001>

<bundles_post_ra>
// kernel: tpu_custom_call.1
= control target key start
LH: loop header
LB: loop body
LE: loop exit
PB: predicated region body
PF: predicated region fallthrough
CT: control target
= control target key end

     0   :  { %9 = vsyncpa [#allocation3], 0  ;;  %s1446_s0 = inlined_call_operand.vmem [shape: f32[16,16], index: 0, kind: input, shape index: {}]   ;;  %s1447_s1 = inlined_call_operand.hbm [shape: f32[16,128], index: 1, kind: input, shape index: {}, may-alias: {1,4}]   ;;  %s1448_s2 = inlined_call_operand.hbm [shape: f32[16,384], index: 2, kind: input, shape index: {}]   ;;  %s1449_s3 = inlined_call_operand.hbm [shape: f32[128,384], index: 3, kind: input, shape index: {}]   ;;  %s1450_s4 = inlined_call_operand.hbm [shape: f32[16,128], index: 4, kind: output, shape index: {}, may-alias: {1,4}]  }
   0x1   :  { %11 = vsyncpa [#allocation3 + $0x1], 0 }
   0x2   :  { %12 = vsyncpa [#allocation6], 0 }
   0x3   :  { %13 = vsyncpa [#allocation4], 0 }
   0x4   :  { %15 = vsyncpa [#allocation4 + $0x1], 0  ;;  %s1188_s15 = smov 0   ;;  %s1190_s16 = smov 0  }
   0x5   :  { %s1192_s17 = smov 0   ;;  %s1194_s18 = smov 0  }
   0x6 LB: > { %s1209_s19 = sadd.s32 4294967295, %s1152_s18   ;;  %s760_s20 = sadd.s32 4294967294, %s1152_s18   ;;  %s1152_s18 = sphi %s1194_s18, %s1470_s18   ;;  %s1148_s17 = sphi %s1192_s17, %s1469_s17   ;;  %s1144_s16 = sphi %s1190_s16, %s1468_s16   ;;  %s1140_s15 = sphi %s1188_s15, %s1467_s15  }
   0x7   : > { %p67_p0 = scmp.ne.s32.totalorder %s1144_s16, %s1140_s15  ;;  %p1451_p1 = scmp.eq.s32.totalorder %s1209_s19, 0 }
   0x8   : > { %p139_p3 = scmp.eq.s32.totalorder %s760_s20, 1  ;;  %p761_p5 = scmp.ge.s32.totalorder %s1152_s18, 1 }
   0x9   : > { %p1218_p4 = por %p1451_p1, %p67_p0  ;;  %p146_p7 = scmp.lt.s32.totalorder %s1152_s18, 3 }
   0xa   : > { %p1223_p6 = por %p139_p3, %p67_p0  ;;  %s1154_s24 = smov [#allocation5]  }
   0xb   : > { %s1454_s21 = scalar_select %p1218_p4, 1, 0 }
   0xc   : > { %s1455_s22 = scalar_select %p1223_p6, 1, 0 }
   0xd   : > { %p1228_p8 = pnand %p761_p5, %p146_p7  ;;  %s158_s25 = sshll.u32 %s1154_s24, 4  ;;  %s1232_s25 = int_to_ptr.vmem [resolvable:$true] %s158_s25 }
   0xe   : > { %s1155_s27 = smov [#allocation7]   ;;  %s996_s5 = scalar_lea.hbm %s1448_s2, 768 }
   0xf   : > { %p918_p9 = pneg %p1228_p8  ;;  %s171_s28 = sshll.u32 %s1155_s27, 4  ;;  %s1243_s28 = int_to_ptr.vmem [resolvable:$true] %s171_s28 }
  0x10   : > { %p997_p12 = scmp.ne.s32.totalorder %s1448_s2, %s996_s5  ;;  %p1003_p5 = scmp.lt.u32.totalorder %s996_s5, %s1448_s2 }
  0x11   : > { %p1239_p11 = pnand %p918_p9, %p1451_p1 }
  0x13   : > { %p998_p13 = pneg %p1239_p11 }
  0x15   : > { %p999_p0 = pnand %p998_p13, %p997_p12 }
  0x17   : > { %p1000_p3 = pneg %p999_p0 }
  0x19   : > { %p1005_p7 = pnand %p1003_p5, %p1000_p3 }
  0x1b   : > { %1008 = shalt.err (!%p1005_p7)
}
  0x1c   : > { %s1009_s10 = scalar_lea.vmem %s1232_s25, 768  ;;  %p1017_p2 = scmp.lt.s32.totalorder %s1232_s25, %s1232_s25 }
  0x1d   : > { %p1010_p9 = scmp.ne.s32.totalorder %s1232_s25, %s1009_s10  ;;  %p1018_p12 = scmp.lt.s32.totalorder %s1009_s10, %s1009_s10 }
  0x1f   : > { %p1012_p10 = pnand %p1010_p9, %p998_p13  ;;  %p1019_p0 = por %p1018_p12, %p1017_p2 }
  0x21   : > { %p1013_p1 = pneg %p1012_p10 }
  0x23   : > { %p1020_p6 = pnand %p1019_p0, %p1013_p1 }
  0x25   : > { %1023 = shalt.err (!%p1020_p6)
}
  0x26   : > { %s1156_s11 = smov 384   ;;  %s1157_s12 = smov 24  }
  0x27   : > { %921 = dma.hbm_to_vmem [thread:$0]  (!%p1239_p11), %s1448_s2, 768, %s1232_s25, [#allocation6], %s1156_s11, %s1156_s11, %s1157_s12  }
  0x28   : > { %s1024_s27 = scalar_lea.hbm %s1449_s3, 6144 }
  0x29   : > { %p1025_p2 = scmp.ne.s32.totalorder %s1449_s3, %s1024_s27  ;;  %p1031_p10 = scmp.lt.u32.totalorder %s1024_s27, %s1449_s3 }
  0x2b   : > { %p1027_p1 = pnand %p1025_p2, %p998_p13 }
  0x2d   : > { %p1028_p6 = pneg %p1027_p1 }
  0x2f   : > { %p1033_p3 = pnand %p1031_p10, %p1028_p6 }
  0x31   : > { %1036 = shalt.err (!%p1033_p3)
}
  0x32   : > { %s1037_s25 = scalar_lea.vmem %s1243_s28, 6144  ;;  %p1045_p12 = scmp.lt.s32.totalorder %s1243_s28, %s1243_s28 }
  0x33   : > { %p1038_p5 = scmp.ne.s32.totalorder %s1243_s28, %s1037_s25  ;;  %p1046_p0 = scmp.lt.s32.totalorder %s1037_s25, %s1037_s25 }
  0x35   : > { %p1040_p7 = pnand %p1038_p5, %p998_p13  ;;  %p1047_p2 = por %p1046_p0, %p1045_p12 }
  0x37   : > { %p1041_p9 = pneg %p1040_p7 }
  0x39   : > { %p1048_p1 = pnand %p1047_p2, %p1041_p9 }
  0x3b   : > { %1051 = shalt.err (!%p1048_p1)
}
  0x3c   : > { %924 = dma.hbm_to_vmem [thread:$0]  (!%p1239_p11), %s1449_s3, 6144, %s1243_s28, [#allocation6], %s1156_s11, %s1156_s11, %s1157_s12  }
  0x3d   : > { %s1298_s9 = sadd.s32 1, %s1152_s18   ;;  %s54_s26 = sadd.s32 1, %s1148_s17 }
  0x3e   : > { %s51_s10 = ssub.s32 %s1152_s18, %s1298_s9  ;;  %p61_p13 = scmp.ne.s32.totalorder %s1148_s17, %s1144_s16 }
  0x3f   : > { %p52_p6 = scmp.eq.s32.totalorder %s51_s10, 0  ;;  %p62_p10 = scmp.eq.s32.totalorder %s1152_s18, 0 }
  0x40   : > { %p1458_p3 = scmp.eq.s32.totalorder %s1209_s19, 1  ;;  %p935_p7 = scmp.lt.s32.totalorder %s1152_s18, 2 }
  0x41   : > { %s1314_s14 = scalar_select %p52_p6, %s1148_s17, %s54_s26  }
  0x42   : > { %p1308_p5 = por %p1458_p3, %p61_p13  ;;  %p63_p9 = por %p62_p10, %p61_p13 }
  0x43   : > { %s192_s20 = sand.u32 1, %s1148_s17   ;;  %s766_s28 = sshll.u32 %s1152_s18, 7 }
  0x44   : > { %s1459_s13 = scalar_select %p1308_p5, 1, 0 }
  0x45   : > { %s765_s24 = sshll.u32 %s192_s20, 3  ;;  %s1321_s27 = scalar_lea.hbm %s1447_s1, %s766_s28 }
  0x46   : > { %s196_s29 = scalar_lea.vmem [#allocation2], %s765_s24  ;;  %p1325_p11 = pnand %p935_p7, %p63_p9 }
  0x47   : > { %s203_s30 = sshll.u32 %s196_s29, 4  ;;  %s193_s6 = scalar_lea.sflag [#allocation3], %s192_s20  ;;  %s1323_s30 = int_to_ptr.vmem [resolvable:$true] %s203_s30 }
  0x48   : > { %s1052_s25 = scalar_lea.hbm %s1321_s27, 128  ;;  %p1054_p0 = pneg %p1325_p11 }
  0x49   : > { %p1053_p12 = scmp.ne.s32.totalorder %s1321_s27, %s1052_s25  ;;  %s1057_s26 = scalar_lea.hbm %s1447_s1, 256 }
  0x4a   : > { %p1058_p13 = scmp.lt.u32.totalorder %s1321_s27, %s1447_s1  ;;  %p1059_p6 = scmp.lt.u32.totalorder %s1057_s26, %s1052_s25 }
  0x4b   : > { %p1055_p2 = pnand %p1054_p0, %p1053_p12  ;;  %p1061_p3 = scmp.lt.u32.totalorder %s1052_s25, %s1321_s27 }
  0x4c   : > { %p1060_p10 = por %p1059_p6, %p1058_p13 }
  0x4d   : > { %p1056_p1 = pneg %p1055_p2 }
  0x4e   : > { %p1062_p7 = por %p1061_p3, %p1060_p10 }
  0x50   : > { %p1063_p9 = pnand %p1062_p7, %p1056_p1 }
  0x52   : > { %1066 = shalt.err (!%p1063_p9)
}
  0x53   : > { %s1067_s20 = scalar_lea.vmem %s1323_s30, 128  ;;  %s1158_s28 = smov [#allocation2]  }
  0x54   : > { %p1068_p12 = scmp.ne.s32.totalorder %s1323_s30, %s1067_s20  ;;  %s1072_s11 = sshll.u32 %s1158_s28, 4  ;;  %s1073_s11 = int_to_ptr.vmem [resolvable:$false] %s1072_s11 }
  0x55   : > { %s1074_s12 = scalar_lea.vmem %s1073_s11, 256  ;;  %p1075_p4 = scmp.lt.s32.totalorder %s1323_s30, %s1073_s11 }
  0x56   : > { %p1070_p2 = pnand %p1068_p12, %p1054_p0  ;;  %p1076_p13 = scmp.lt.s32.totalorder %s1074_s12, %s1067_s20 }
  0x58   : > { %p1071_p5 = pneg %p1070_p2  ;;  %p1077_p6 = por %p1076_p13, %p1075_p4 }
  0x5a   : > { %p1078_p10 = pnand %p1077_p6, %p1071_p5 }
  0x5c   : > { %1081 = shalt.err (!%p1078_p10)
}
  0x5d   : > { %928 = dma.hbm_to_vmem [thread:$0]  (!%p1325_p11), %s1321_s27, 128, %s1323_s30, %s193_s6  }
  0x5e   : > { %212 = sbr.rel (%p1228_p8) target bundleno = 470 (0x1d6), region = 36  ;;  %s1357_s29 = sand.u32 (!%p1228_p8), 1, %s1144_s16  }
  0x5f   : > { %s768_s25 = sshll.u32 (!%p1228_p8), %s1357_s29, 3  ;;  %s215_s7 = scalar_lea.sflag (!%p1228_p8), [#allocation3], %s1357_s29 }
  0x60   : > { %s1363_s8 = scalar_lea.vmem (!%p1228_p8), [#allocation2], %s768_s25  ;;  %p1461_p4 = scmp.ne.s32.totalorder (!%p1228_p8), %s1454_s21, 0 }
  0x65   : > { %1127 = dma.done.wait (%p1461_p4), %s215_s7, 128  }
  0x66   : > { %1129 = vsyncadd (%p1461_p4), %s215_s7, 4294967168  ;;  %p1462_p5 = scmp.eq.s32.totalorder %s1209_s19, 0 }
  0x68   : > { %1131 = dma.done.wait (%p1462_p5), [#allocation6], 6912   ;;  %p1463_p8 = pmov %p1462_p5 }
  0x69   : > { %p255_p11 = scmp.lt.s32.totalorder %s1209_s19, 1  ;;  %v1159_v0 = vmov 0.0   ;;  %v1160_v1 = vmov 0.0|0.0   ;;  %vm1161_vm0 = vmmov 0   ;;  %v262_v2 = vld [vmem:[#allocation5 + $0x8] sm:$0xff]  ;;  %v265_v3 = vld [vmem:[#allocation5 + $0x20] sm:$0xff] }
  0x6a   : > { %1133 = vsyncadd (%p1463_p8), [#allocation6], 4294960384  ;;  %335 = vmatprep.mubr.f32.mxu0 %v1159_v0  ;;  %847 = vmatprep.subr.bf16.mxu1 %v1160_v1  ;;  %v261_v4 = vld [vmem:[#allocation5] sm:$0xff]  ;;  %v843_v5 = vpack.c.bf16 %v265_v3, %v262_v2  ;;  %v264_v6 = vld [vmem:[#allocation5 + $0x18] sm:$0xff]  ;;  %vm267_vm1 = vcmask 130048   ;;  %s778_s6 = sshll.u32 %s1209_s19, 7 }
  0x6b   : > { %s256_s23 = scalar_select %p255_p11, %s1209_s19, 1  ;;  %805 = vmatprep.mubr.msk.f32.mxu1 %vm1161_vm0, %v1159_v0  ;;  %v413_v7 = vld [vmem:[#allocation7 + $0x8] sm:$0xff]  ;;  %v845_v8 = vpack.c.bf16 %v264_v6, %v261_v4  ;;  %v416_v9 = vld [vmem:[#allocation7 + $0x20] sm:$0xff]  ;;  %v415_v11 = vld [vmem:[#allocation7 + $0x18] sm:$0xff] }
  0x6c   : > { %v412_v10 = vld [vmem:[#allocation7] sm:$0xff]  ;;  %844 = vmatprep.subr.bf16.mxu0 %v843_v5  ;;  %v850_v12 = vpack.c.bf16 %v416_v9, %v413_v7  ;;  %v419_v13 = vld [vmem:[#allocation7 + $0x38] sm:$0xff]  ;;  %v422_v14 = vld [vmem:[#allocation7 + $0x50] sm:$0xff]  ;;  %s254_s26 = scalar_lea.vmem [#allocation8], %s768_s25  ;;  %s1402_s28 = scalar_lea.hbm %s1450_s4, %s778_s6 }
  0x6d   : > { %s772_s21 = sshll.u32 %s256_s23, 3  ;;  %846 = vmatpush1.bf16.msra.mxu0 %v845_v8  ;;  %v852_v16 = vpack.c.bf16 %v415_v11, %v412_v10  ;;  %v854_v17 = vpack.c.bf16 %v422_v14, %v419_v13  ;;  %v418_v18 = vld [vmem:[#allocation7 + $0x30] sm:$0xff]  ;;  %v421_v19 = vld [vmem:[#allocation7 + $0x48] sm:$0xff]  ;;  %v428_v21 = vld [vmem:[#allocation7 + $0x80] sm:$0xff]  ;;  %s659_s10 = sshll.u32 %s254_s26, 4  ;;  %s1404_s10 = int_to_ptr.vmem [resolvable:$true] %s659_s10 }
  0x6e   : > { %s258_s5 = scalar_lea.vmem %s1446_s0, %s772_s21  ;;  %851 = vmatprep.subr.bf16.mxu0 %v850_v12  ;;  %v425_v20 = vld [vmem:[#allocation7 + $0x68] sm:$0xff]  ;;  %v856_v22 = vpack.c.bf16 %v421_v19, %v418_v18  ;;  %v424_v24 = vld [vmem:[#allocation7 + $0x60] sm:$0xff]  ;;  %v427_v25 = vld [vmem:[#allocation7 + $0x78] sm:$0xff]  ;;  %s646_s11 = scalar_lea.sflag [#allocation4], %s1357_s29 }
  0x6f   : > { %v260_v15 = vld [vmem:[%s258_s5] sm:$0xff]  ;;  %v858_v23 = vpack.c.bf16 %v428_v21, %v425_v20  ;;  %v431_v27 = vld [vmem:[#allocation7 + $0x98] sm:$0xff]  ;;  %v434_v28 = vld [vmem:[#allocation7 + $0xb0] sm:$0xff]  ;;  %v860_v31 = vpack.c.bf16 %v427_v25, %v424_v24  ;;  %s1082_s12 = scalar_lea.vmem %s1404_s10, 128  ;;  %p1464_p1 = scmp.ne.s32.totalorder %s1459_s13, 0 }
  0x70   : > { %773 = vmatmul.mubr.msk.f32.vlgmr.msra.gmra.mrb[0].mxu0 %vm267_vm1, %v260_v15  ;;  %v263_v26 = vld [vmem:[#allocation5 + $0x10] sm:$0xff]  ;;  %v266_v29 = vld [vmem:[#allocation5 + $0x28] sm:$0xff]  ;;  %v414_v32 = vld [vmem:[#allocation7 + $0x10] sm:$0xff]  ;;  %v862_v34 = vpack.c.bf16 %v434_v28, %v431_v27  ;;  %p1083_p0 = scmp.ne.s32.totalorder %s1404_s10, %s1082_s12  ;;  %s1162_s19 = smov [#allocation8]  }
  0x71   : > { %853 = vmatpush1.bf16.msra.mxu0 %v852_v16  ;;  %524 = vmatprep.mubr.f32.mxu0 %v1159_v0  ;;  %v848_v30 = vpack.c.bf16 %v266_v29, %v263_v26  ;;  %v417_v33 = vld [vmem:[#allocation7 + $0x28] sm:$0xff]  ;;  %v430_v35 = vld [vmem:[#allocation7 + $0x90] sm:$0xff]  ;;  %v440_v39 = vld [vmem:[#allocation7 + $0xe0] sm:$0xff]  ;;  %s1086_s25 = sshll.u32 %s1162_s19, 4  ;;  %s1087_s25 = int_to_ptr.vmem [resolvable:$false] %s1086_s25 }
  0x72   : > { %855 = vmatprep.subr.bf16.mxu0 %v854_v17  ;;  %v433_v36 = vld [vmem:[#allocation7 + $0xa8] sm:$0xff]  ;;  %v883_v38 = vpack.c.bf16 %v417_v33, %v414_v32  ;;  %v420_v40 = vld [vmem:[#allocation7 + $0x40] sm:$0xff]  ;;  %v423_v41 = vld [vmem:[#allocation7 + $0x58] sm:$0xff]  ;;  %p1084_p3 = pnand %p1083_p0, %p1464_p1  ;;  %s1088_s7 = scalar_lea.vmem %s1087_s25, 256 }
  0x73   : > { %v437_v37 = vld [vmem:[#allocation7 + $0xc8] sm:$0xff]  ;;  %849 = vmatpush3.bf16.msra.mxu1 %v848_v30  ;;  %v864_v42 = vpack.c.bf16 %v433_v36, %v430_v35  ;;  %v436_v44 = vld [vmem:[#allocation7 + $0xc0] sm:$0xff]  ;;  %v439_v45 = vld [vmem:[#allocation7 + $0xd8] sm:$0xff]  ;;  %v886_v47 = vpack.c.bf16 %v423_v41, %v420_v40  ;;  %p1089_p9 = scmp.lt.s32.totalorder %s1404_s10, %s1087_s25  ;;  %p1090_p12 = scmp.lt.s32.totalorder %s1088_s7, %s1082_s12 }
  0x74   : > { %882 = vmatprep.subr.bf16.mxu1 %v1160_v1  ;;  %v866_v43 = vpack.c.bf16 %v440_v39, %v437_v37  ;;  %v443_v46 = vld [vmem:[#allocation7 + $0xf8] sm:$0xff]  ;;  %v446_v48 = vld [vmem:[#allocation7 + $0x110] sm:$0xff]  ;;  %v429_v50 = vld [vmem:[#allocation7 + $0x88] sm:$0xff]  ;;  %v868_v51 = vpack.c.bf16 %v439_v45, %v436_v44  ;;  %p1085_p7 = pneg %p1084_p3 }
  0x75   : > { %857 = vmatpush1.bf16.msra.mxu0 %v856_v22  ;;  %v426_v49 = vld [vmem:[#allocation7 + $0x70] sm:$0xff]  ;;  %v870_v52 = vpack.c.bf16 %v446_v48, %v443_v46  ;;  %v445_v54 = vld [vmem:[#allocation7 + $0x108] sm:$0xff]  ;;  %v452_v57 = vld [vmem:[#allocation7 + $0x140] sm:$0xff]  ;;  %p1091_p2 = por %p1090_p12, %p1089_p9 }
  0x76   : > { %859 = vmatprep.subr.bf16.mxu0 %v858_v23  ;;  %806 = vmatmul.mubr.msk.f32.vlgmr.msra.gmra.mrb[0].mxu1 %vm267_vm1, %v260_v15  ;;  %v442_v53 = vld [vmem:[#allocation7 + $0xf0] sm:$0xff]  ;;  %v449_v55 = vld [vmem:[#allocation7 + $0x128] sm:$0xff]  ;;  %v889_v56 = vpack.c.bf16 %v429_v50, %v426_v49  ;;  %v432_v58 = vld [vmem:[#allocation7 + $0xa0] sm:$0xff] }
  0x77   : > { %884 = vmatpush3.bf16.msra.mxu1 %v883_v38  ;;  %840 = vmatprep.mubr.msk.f32.mxu1 %vm1161_vm0, %v1159_v0  ;;  %v435_v59 = vld [vmem:[#allocation7 + $0xb8] sm:$0xff]  ;;  %v872_v60 = vpack.c.bf16 %v445_v54, %v442_v53  ;;  %v874_v61 = vpack.c.bf16 %v452_v57, %v449_v55  ;;  %v448_v62 = vld [vmem:[#allocation7 + $0x120] sm:$0xff]  ;;  %v458_v3 = vld [vmem:[#allocation7 + $0x170] sm:$0xff]  ;;  %p1092_p13 = pnand %p1091_p2, %p1085_p7 }
  0x78   : > { %885 = vmatprep.subr.bf16.mxu1 %v1160_v1  ;;  %v451_v63 = vld [vmem:[#allocation7 + $0x138] sm:$0xff]  ;;  %v892_v2 = vpack.c.bf16 %v435_v59, %v432_v58  ;;  %v438_v4 = vld [vmem:[#allocation7 + $0xd0] sm:$0xff]  ;;  %v441_v5 = vld [vmem:[#allocation7 + $0xe8] sm:$0xff] }
  0x79   : > { %861 = vmatpush1.bf16.msra.mxu0 %v860_v31  ;;  %v455_v0 = vld [vmem:[#allocation7 + $0x158] sm:$0xff]  ;;  %v876_v6 = vpack.c.bf16 %v451_v63, %v448_v62  ;;  %v454_v8 = vld [vmem:[#allocation7 + $0x150] sm:$0xff]  ;;  %v457_v9 = vld [vmem:[#allocation7 + $0x168] sm:$0xff]  ;;  %v895_v10 = vpack.c.bf16 %v441_v5, %v438_v4 }
  0x7a   : > { %863 = vmatprep.subr.bf16.mxu0 %v862_v34  ;;  %v878_v7 = vpack.c.bf16 %v458_v3, %v455_v0  ;;  %v444_v11 = vld [vmem:[#allocation7 + $0x100] sm:$0xff]  ;;  %v447_v12 = vld [vmem:[#allocation7 + $0x118] sm:$0xff]  ;;  %v880_v13 = vpack.c.bf16 %v457_v9, %v454_v8  ;;  %v450_v15 = vld [vmem:[#allocation7 + $0x130] sm:$0xff] }
  0x7b   : > { %887 = vmatpush3.bf16.msra.mxu1 %v886_v47  ;;  %v898_v14 = vpack.c.bf16 %v447_v12, %v444_v11  ;;  %v453_v16 = vld [vmem:[#allocation7 + $0x148] sm:$0xff]  ;;  %v456_v19 = vld [vmem:[#allocation7 + $0x160] sm:$0xff]  ;;  %v459_v20 = vld [vmem:[#allocation7 + $0x178] sm:$0xff] }
  0x7c   : > { %888 = vmatprep.subr.bf16.mxu1 %v1160_v1  ;;  %v259_v17 = vld [vmem:[%s1363_s8] sm:$0xff]  ;;  %v901_v18 = vpack.c.bf16 %v453_v16, %v450_v15  ;;  %v904_v21 = vpack.c.bf16 %v459_v20, %v456_v19 }
  0x7d   : > { %865 = vmatpush1.bf16.msra.mxu0 %v864_v42 }
  0x7e   : > { %867 = vmatprep.subr.bf16.mxu0 %v866_v43 }
  0x7f   : > { %890 = vmatpush3.bf16.msra.mxu1 %v889_v56 }
  0x80   : > { %891 = vmatprep.subr.bf16.mxu1 %v1160_v1 }
  0x81   : > { %869 = vmatpush1.bf16.msra.mxu0 %v868_v51 }
  0x82   : > { %871 = vmatprep.subr.bf16.mxu0 %v870_v52 }
  0x83   : > { %893 = vmatpush3.bf16.msra.mxu1 %v892_v2 }
  0x84   : > { %894 = vmatprep.subr.bf16.mxu1 %v1160_v1 }
  0x85   : > { %873 = vmatpush1.bf16.msra.mxu0 %v872_v60 }
  0x86   : > { %875 = vmatprep.subr.bf16.mxu0 %v874_v61 }
  0x87   : > { %896 = vmatpush3.bf16.msra.mxu1 %v895_v10 }
  0x88   : > { %897 = vmatprep.subr.bf16.mxu1 %v1160_v1 }
  0x89   : > { %877 = vmatpush1.bf16.msra.mxu0 %v876_v6 }
  0x8a   : > { %879 = vmatprep.subr.bf16.mxu0 %v878_v7 }
  0x8b   : > { %899 = vmatpush3.bf16.msra.mxu1 %v898_v14 }
  0x8c   : > { %900 = vmatprep.subr.bf16.mxu1 %v1160_v1 }
  0x8d   : > { %881 = vmatpush1.bf16.msra.mxu0 %v880_v13 }
  0x8f   : > { %902 = vmatpush3.bf16.msra.mxu1 %v901_v18 }
  0x90   : > { %525 = vmatmul.mubr.f32.vlgmr.msra.gmra.mrb[2].mxu0 %v259_v17  ;;  %903 = vmatprep.subr.bf16.mxu1 %v1160_v1 }
  0x93   : > { %905 = vmatpush3.bf16.msra.mxu1 %v904_v21 }
  0x96   : > { %841 = vmatmul.mubr.f32.vlgmr.msra.gmra.mrb[2].mxu1 %v259_v17 }
 0x143   : > { %v337_v22 = vpop.f32.mrb[0].mxu0 }
 0x144   : > { %v339_v23 = vpop.f32.mrb[1].mxu0 }
 0x149   : > { %v408_v24 = vpop.f32.mrb[0].mxu1 }
 0x14a   : > { %v807_v25 = vpop.f32.mrb[1].mxu1 }
 0x163   : > { %v526_v26 = vpop.f32.mrb[2].mxu0 }
 0x164   : > { %v601_v27 = vmul.f32 %v526_v26, %v337_v22  ;;  %v528_v28 = vpop.f32.mrb[3].mxu0 }
 0x165   : > { %v608_v29 = vmul.f32 %v528_v28, %v339_v23 }
 0x166   : > { %v775_v30 = vmul.f32 -1.442695, %v601_v27 }
 0x167   : > { %v776_v42 = vmul.f32 -1.442695, %v608_v29 }
 0x168   : > { %978 = vpow2.f32 %v775_v30 }
 0x169   : > { %v597_v31 = vpop.f32.mrb[2].mxu1 }
 0x16a   : > { %v842_v32 = vpop.f32.mrb[3].mxu1 }
 0x172   : > { %v979_v33 = vpop.eup %978 }
 0x173   : > { %v605_v34 = vadd.f32 1.0, %v979_v33 }
 0x175   : > { %980 = vrcp.f32 %v605_v34 }
 0x17f   : > { %v981_v35 = vpop.eup %980 }
 0x180   : > { %v615_v36 = vmul.f32 %v981_v35, %v597_v31 }
 0x182   : > { %v616_v1 = vmul.f32 %v615_v36, %v408_v24 }
 0x184   : > { %v620_v37 = vand.u32 2147483647, %v616_v1  ;;  %v617_v49 = vmax.f32 %v616_v1, 0.0  ;;  %vm618_vm3 = vcmp.ne.f32.partialorder %v616_v1, %v616_v1 }
 0x186   : > { %v621_v38 = vsub.f32 0.0, %v620_v37 }
 0x188   : > { %v622_v39 = vmul.f32 1.442695, %v621_v38 }
 0x18a   : > { %982 = vpow2.f32 %v622_v39 }
 0x194   : > { %v983_v40 = vpop.eup %982 }
 0x195   : > { %v624_v41 = vadd.f32 1.0, %v983_v40  ;;  %v627_v43 = vmul.f32 -0.5, %v983_v40  ;;  %v630_v45 = vand.u32 2147483647, %v983_v40 }
 0x197   : > { %984 = vlog2.f32 %v624_v41  ;;  %v628_v44 = vadd.f32 1.0, %v627_v43  ;;  %vm631_vm2 = vcmp.lt.f32.partialorder %v630_v45, 0.0004427343 }
 0x198   : > { %986 = vpow2.f32 %v776_v42 }
 0x199   : > { %v629_v48 = vmul.f32 %v983_v40, %v628_v44  ;;  %988 = vlog2.f32 %v259_v17 }
 0x1a1   : > { %v985_v46 = vpop.eup %984 }
 0x1a2   : > { %v626_v47 = vmul.f32 0.6931472, %v985_v46  ;;  %v987_v51 = vpop.eup %986 }
 0x1a3   : > { %v612_v54 = vadd.f32 1.0, %v987_v51  ;;  %v989_v55 = vpop.eup %988 }
 0x1a4   : > { %v632_v50 = vsel %vm631_vm2, %v629_v48, %v626_v47  ;;  %v638_v56 = vmul.f32 0.6931472, %v989_v55 }
 0x1a5   : > { %v633_v52 = vadd.f32 %v632_v50, %v617_v49 }
 0x1a7   : > { %v634_v53 = vsel %vm618_vm3, %v616_v1, %v633_v52 }
 0x1a8   : > { %990 = vlog2.f32 %v634_v53 }
 0x1a9   : > { %992 = vrcp.f32 %v612_v54 }
 0x1b2   : > { %v991_v57 = vpop.eup %990 }
 0x1b3   : > { %v636_v58 = vmul.f32 0.6931472, %v991_v57  ;;  %v993_v60 = vpop.eup %992 }
 0x1b5   : > { %v639_v59 = vsub.f32 %v638_v56, %v636_v58 }
 0x1b7   : > { %v640_v61 = vmul.f32 %v993_v60, %v639_v59 }
 0x1b9   : > { %v641_v62 = vadd.f32 %v640_v61, %v636_v58 }
 0x1bb   : > { %v642_v63 = vmul.f32 1.442695, %v641_v62 }
 0x1bd   : > { %994 = vpow2.f32 %v642_v63 }
 0x1c7   : > { %v995_v0 = vpop.eup %994 }
 0x1c8   : > { %644 = vst [vmem:[%s254_s26] sm:$0xff] %v995_v0 }
 0x1c9   : > { %1095 = shalt.err (!%p1092_p13)
}
 0x1ca   : > { %s1096_s29 = scalar_lea.hbm %s1402_s28, 128  ;;  %s1100_s21 = scalar_lea.hbm %s1450_s4, 256 }
 0x1cb   : > { %p1097_p6 = scmp.ne.s32.totalorder %s1402_s28, %s1096_s29  ;;  %p1101_p5 = scmp.lt.u32.totalorder %s1402_s28, %s1450_s4 }
 0x1cc   : > { %p1102_p8 = scmp.lt.u32.totalorder %s1100_s21, %s1096_s29  ;;  %p1104_p0 = scmp.lt.u32.totalorder %s1096_s29, %s1402_s28 }
 0x1cd   : > { %p1098_p10 = pnand %p1097_p6, %p1464_p1 }
 0x1ce   : > { %p1103_p11 = por %p1102_p8, %p1101_p5 }
 0x1cf   : > { %p1099_p4 = pneg %p1098_p10 }
 0x1d0   : > { %p1105_p3 = por %p1104_p0, %p1103_p11 }
 0x1d2   : > { %p1106_p7 = pnand %p1105_p3, %p1099_p4 }
 0x1d4   : > { %1109 = shalt.err (!%p1106_p7)
}
 0x1d5   : > { %916 = dma.vmem_to_hbm [thread:$0]  (%p1464_p1), %s1404_s10, 128, %s1402_s28, %s646_s11  }
 0x1d6 PF: > { %s671_s5 = sand.u32 1, %s1140_s15   ;;  %p1465_p9 = scmp.ne.s32.totalorder %s1455_s22, 0 }
 0x1d7   : > { %p1466_p12 = scmp.ge.s32.totalorder %s1152_s18, 2  ;;  %s672_s6 = scalar_lea.sflag [#allocation4], %s671_s5 }
 0x1d9   : > { %p930_p2 = pnand %p1466_p12, %p1465_p9 }
 0x1db   : > { %1135 = dma.done.wait (!%p930_p2), %s672_s6, 128  }
 0x1dc   : > { %1137 = vsyncadd (!%p930_p2), %s672_s6, 4294967168  ;;  %p18_p13 = scmp.ge.s32.totalorder %s1298_s9, 4   ;;  %s1467_s15 = smov %s1144_s16 }
 0x1dd   : > { %s1468_s16 = smov %s1148_s17  ;;  %s1469_s17 = smov %s1314_s14 }
 0x1de   : > { %s1470_s18 = smov %s1298_s9  ;;  %20 = sbr.rel (!%p18_p13) target bundleno = 6 (0x6), region = 92 }
 0x1e5   :  { %677 = vsyncpa [#allocation3], 1 }
 0x1e6   :  { %679 = vsyncpa [#allocation3 + $0x1], 1 }
 0x1e7   :  { %680 = vsyncpa [#allocation6], 1 }
 0x1e8   :  { %681 = vsyncpa [#allocation4], 1 }
 0x1e9   :  { %683 = vsyncpa [#allocation4 + $0x1], 1 }

// kernel: tpu_custom_call.1
= control target key start
LH: loop header
LB: loop body
LE: loop exit
PB: predicated region body
PF: predicated region fallthrough
CT: control target
= control target key end

     0   :  { %9 = vsyncpa [#allocation3], 0  ;;  %s1446_s0 = inlined_call_operand.vmem [shape: f32[16,16], index: 0, kind: input, shape index: {}]   ;;  %s1447_s1 = inlined_call_operand.hbm [shape: f32[16,128], index: 1, kind: input, shape index: {}, may-alias: {1,4}]   ;;  %s1448_s2 = inlined_call_operand.hbm [shape: f32[16,384], index: 2, kind: input, shape index: {}]   ;;  %s1449_s3 = inlined_call_operand.hbm [shape: f32[128,384], index: 3, kind: input, shape index: {}]   ;;  %s1450_s4 = inlined_call_operand.hbm [shape: f32[16,128], index: 4, kind: output, shape index: {}, may-alias: {1,4}]  }
   0x1   :  { %11 = vsyncpa [#allocation3 + $0x1], 0 }
   0x2   :  { %12 = vsyncpa [#allocation6], 0 }
   0x3   :  { %13 = vsyncpa [#allocation4], 0 }
   0x4   :  { %15 = vsyncpa [#allocation4 + $0x1], 0  ;;  %s1188_s15 = smov 0   ;;  %s1190_s16 = smov 0  }
   0x5   :  { %s1192_s17 = smov 0   ;;  %s1194_s18 = smov 0  }
   0x6 LB: > { %s1209_s19 = sadd.s32 4294967295, %s1152_s18   ;;  %s760_s20 = sadd.s32 4294967294, %s1152_s18   ;;  %s1152_s18 = sphi %s1194_s18, %s1470_s18   ;;  %s1148_s17 = sphi %s1192_s17, %s1469_s17   ;;  %s1144_s16 = sphi %s1190_s16, %s1468_s16   ;;  %s1140_s15 = sphi %s1188_s15, %s1467_s15  }
   0x7   : > { %p67_p0 = scmp.ne.s32.totalorder %s1144_s16, %s1140_s15  ;;  %p1451_p1 = scmp.eq.s32.totalorder %s1209_s19, 0 }
   0x8   : > { %p139_p3 = scmp.eq.s32.totalorder %s760_s20, 1  ;;  %p761_p5 = scmp.ge.s32.totalorder %s1152_s18, 1 }
   0x9   : > { %p1218_p4 = por %p1451_p1, %p67_p0  ;;  %p146_p7 = scmp.lt.s32.totalorder %s1152_s18, 3 }
   0xa   : > { %p1223_p6 = por %p139_p3, %p67_p0  ;;  %s1154_s24 = smov [#allocation5]  }
   0xb   : > { %s1454_s21 = scalar_select %p1218_p4, 1, 0 }
   0xc   : > { %s1455_s22 = scalar_select %p1223_p6, 1, 0 }
   0xd   : > { %p1228_p8 = pnand %p761_p5, %p146_p7  ;;  %s158_s25 = sshll.u32 %s1154_s24, 4  ;;  %s1232_s25 = int_to_ptr.vmem [resolvable:$true] %s158_s25 }
   0xe   : > { %s1155_s27 = smov [#allocation7]   ;;  %s996_s5 = scalar_lea.hbm %s1448_s2, 768 }
   0xf   : > { %p918_p9 = pneg %p1228_p8  ;;  %s171_s28 = sshll.u32 %s1155_s27, 4  ;;  %s1243_s28 = int_to_ptr.vmem [resolvable:$true] %s171_s28 }
  0x10   : > { %p997_p12 = scmp.ne.s32.totalorder %s1448_s2, %s996_s5  ;;  %p1003_p5 = scmp.lt.u32.totalorder %s996_s5, %s1448_s2 }
  0x11   : > { %p1239_p11 = pnand %p918_p9, %p1451_p1 }
  0x13   : > { %p998_p13 = pneg %p1239_p11 }
  0x15   : > { %p999_p0 = pnand %p998_p13, %p997_p12 }
  0x17   : > { %p1000_p3 = pneg %p999_p0 }
  0x19   : > { %p1005_p7 = pnand %p1003_p5, %p1000_p3 }
  0x1b   : > { %1008 = shalt.err (!%p1005_p7)
}
  0x1c   : > { %s1009_s10 = scalar_lea.vmem %s1232_s25, 768  ;;  %p1017_p2 = scmp.lt.s32.totalorder %s1232_s25, %s1232_s25 }
  0x1d   : > { %p1010_p9 = scmp.ne.s32.totalorder %s1232_s25, %s1009_s10  ;;  %p1018_p12 = scmp.lt.s32.totalorder %s1009_s10, %s1009_s10 }
  0x1f   : > { %p1012_p10 = pnand %p1010_p9, %p998_p13  ;;  %p1019_p0 = por %p1018_p12, %p1017_p2 }
  0x21   : > { %p1013_p1 = pneg %p1012_p10 }
  0x23   : > { %p1020_p6 = pnand %p1019_p0, %p1013_p1 }
  0x25   : > { %1023 = shalt.err (!%p1020_p6)
}
  0x26   : > { %s1156_s11 = smov 384   ;;  %s1157_s12 = smov 24  }
  0x27   : > { %921 = dma.hbm_to_vmem [thread:$0]  (!%p1239_p11), %s1448_s2, 768, %s1232_s25, [#allocation6], %s1156_s11, %s1156_s11, %s1157_s12  }
  0x28   : > { %s1024_s27 = scalar_lea.hbm %s1449_s3, 6144 }
  0x29   : > { %p1025_p2 = scmp.ne.s32.totalorder %s1449_s3, %s1024_s27  ;;  %p1031_p10 = scmp.lt.u32.totalorder %s1024_s27, %s1449_s3 }
  0x2b   : > { %p1027_p1 = pnand %p1025_p2, %p998_p13 }
  0x2d   : > { %p1028_p6 = pneg %p1027_p1 }
  0x2f   : > { %p1033_p3 = pnand %p1031_p10, %p1028_p6 }
  0x31   : > { %1036 = shalt.err (!%p1033_p3)
}
  0x32   : > { %s1037_s25 = scalar_lea.vmem %s1243_s28, 6144  ;;  %p1045_p12 = scmp.lt.s32.totalorder %s1243_s28, %s1243_s28 }
  0x33   : > { %p1038_p5 = scmp.ne.s32.totalorder %s1243_s28, %s1037_s25  ;;  %p1046_p0 = scmp.lt.s32.totalorder %s1037_s25, %s1037_s25 }
  0x35   : > { %p1040_p7 = pnand %p1038_p5, %p998_p13  ;;  %p1047_p2 = por %p1046_p0, %p1045_p12 }
  0x37   : > { %p1041_p9 = pneg %p1040_p7 }
  0x39   : > { %p1048_p1 = pnand %p1047_p2, %p1041_p9 }
  0x3b   : > { %1051 = shalt.err (!%p1048_p1)
}
  0x3c   : > { %924 = dma.hbm_to_vmem [thread:$0]  (!%p1239_p11), %s1449_s3, 6144, %s1243_s28, [#allocation6], %s1156_s11, %s1156_s11, %s1157_s12  }
  0x3d   : > { %s1298_s9 = sadd.s32 1, %s1152_s18   ;;  %s54_s26 = sadd.s32 1, %s1148_s17 }
  0x3e   : > { %s51_s10 = ssub.s32 %s1152_s18, %s1298_s9  ;;  %p61_p13 = scmp.ne.s32.totalorder %s1148_s17, %s1144_s16 }
  0x3f   : > { %p52_p6 = scmp.eq.s32.totalorder %s51_s10, 0  ;;  %p62_p10 = scmp.eq.s32.totalorder %s1152_s18, 0 }
  0x40   : > { %p1458_p3 = scmp.eq.s32.totalorder %s1209_s19, 1  ;;  %p935_p7 = scmp.lt.s32.totalorder %s1152_s18, 2 }
  0x41   : > { %s1314_s14 = scalar_select %p52_p6, %s1148_s17, %s54_s26  }
  0x42   : > { %p1308_p5 = por %p1458_p3, %p61_p13  ;;  %p63_p9 = por %p62_p10, %p61_p13 }
  0x43   : > { %s192_s20 = sand.u32 1, %s1148_s17   ;;  %s766_s28 = sshll.u32 %s1152_s18, 7 }
  0x44   : > { %s1459_s13 = scalar_select %p1308_p5, 1, 0 }
  0x45   : > { %s765_s24 = sshll.u32 %s192_s20, 3  ;;  %s1321_s27 = scalar_lea.hbm %s1447_s1, %s766_s28 }
  0x46   : > { %s196_s29 = scalar_lea.vmem [#allocation2], %s765_s24  ;;  %p1325_p11 = pnand %p935_p7, %p63_p9 }
  0x47   : > { %s203_s30 = sshll.u32 %s196_s29, 4  ;;  %s193_s6 = scalar_lea.sflag [#allocation3], %s192_s20  ;;  %s1323_s30 = int_to_ptr.vmem [resolvable:$true] %s203_s30 }
  0x48   : > { %s1052_s25 = scalar_lea.hbm %s1321_s27, 128  ;;  %p1054_p0 = pneg %p1325_p11 }
  0x49   : > { %p1053_p12 = scmp.ne.s32.totalorder %s1321_s27, %s1052_s25  ;;  %s1057_s26 = scalar_lea.hbm %s1447_s1, 256 }
  0x4a   : > { %p1058_p13 = scmp.lt.u32.totalorder %s1321_s27, %s1447_s1  ;;  %p1059_p6 = scmp.lt.u32.totalorder %s1057_s26, %s1052_s25 }
  0x4b   : > { %p1055_p2 = pnand %p1054_p0, %p1053_p12  ;;  %p1061_p3 = scmp.lt.u32.totalorder %s1052_s25, %s1321_s27 }
  0x4c   : > { %p1060_p10 = por %p1059_p6, %p1058_p13 }
  0x4d   : > { %p1056_p1 = pneg %p1055_p2 }
  0x4e   : > { %p1062_p7 = por %p1061_p3, %p1060_p10 }
  0x50   : > { %p1063_p9 = pnand %p1062_p7, %p1056_p1 }
  0x52   : > { %1066 = shalt.err (!%p1063_p9)
}
  0x53   : > { %s1067_s20 = scalar_lea.vmem %s1323_s30, 128  ;;  %s1158_s28 = smov [#allocation2]  }
  0x54   : > { %p1068_p12 = scmp.ne.s32.totalorder %s1323_s30, %s1067_s20  ;;  %s1072_s11 = sshll.u32 %s1158_s28, 4  ;;  %s1073_s11 = int_to_ptr.vmem [resolvable:$false] %s1072_s11 }
  0x55   : > { %s1074_s12 = scalar_lea.vmem %s1073_s11, 256  ;;  %p1075_p4 = scmp.lt.s32.totalorder %s1323_s30, %s1073_s11 }
  0x56   : > { %p1070_p2 = pnand %p1068_p12, %p1054_p0  ;;  %p1076_p13 = scmp.lt.s32.totalorder %s1074_s12, %s1067_s20 }
  0x58   : > { %p1071_p5 = pneg %p1070_p2  ;;  %p1077_p6 = por %p1076_p13, %p1075_p4 }
  0x5a   : > { %p1078_p10 = pnand %p1077_p6, %p1071_p5 }
  0x5c   : > { %1081 = shalt.err (!%p1078_p10)
}
  0x5d   : > { %928 = dma.hbm_to_vmem [thread:$0]  (!%p1325_p11), %s1321_s27, 128, %s1323_s30, %s193_s6  }
  0x5e   : > { %212 = sbr.rel (%p1228_p8) target bundleno = 470 (0x1d6), region = 36  ;;  %s1357_s29 = sand.u32 (!%p1228_p8), 1, %s1144_s16  }
  0x5f   : > { %s768_s25 = sshll.u32 (!%p1228_p8), %s1357_s29, 3  ;;  %s215_s7 = scalar_lea.sflag (!%p1228_p8), [#allocation3], %s1357_s29 }
  0x60   : > { %s1363_s8 = scalar_lea.vmem (!%p1228_p8), [#allocation2], %s768_s25  ;;  %p1461_p4 = scmp.ne.s32.totalorder (!%p1228_p8), %s1454_s21, 0 }
  0x65   : > { %1127 = dma.done.wait (%p1461_p4), %s215_s7, 128  }
  0x66   : > { %1129 = vsyncadd (%p1461_p4), %s215_s7, 4294967168  ;;  %p1462_p5 = scmp.eq.s32.totalorder %s1209_s19, 0 }
  0x68   : > { %1131 = dma.done.wait (%p1462_p5), [#allocation6], 6912   ;;  %p1463_p8 = pmov %p1462_p5 }
  0x69   : > { %p255_p11 = scmp.lt.s32.totalorder %s1209_s19, 1  ;;  %v1159_v0 = vmov 0.0   ;;  %v1160_v1 = vmov 0.0|0.0   ;;  %vm1161_vm0 = vmmov 0   ;;  %v262_v2 = vld [vmem:[#allocation5 + $0x8] sm:$0xff]  ;;  %v265_v3 = vld [vmem:[#allocation5 + $0x20] sm:$0xff] }
  0x6a   : > { %1133 = vsyncadd (%p1463_p8), [#allocation6], 4294960384  ;;  %335 = vmatprep.mubr.f32.mxu0 %v1159_v0  ;;  %847 = vmatprep.subr.bf16.mxu1 %v1160_v1  ;;  %v261_v4 = vld [vmem:[#allocation5] sm:$0xff]  ;;  %v843_v5 = vpack.c.bf16 %v265_v3, %v262_v2  ;;  %v264_v6 = vld [vmem:[#allocation5 + $0x18] sm:$0xff]  ;;  %vm267_vm1 = vcmask 130048   ;;  %s778_s6 = sshll.u32 %s1209_s19, 7 }
  0x6b   : > { %s256_s23 = scalar_select %p255_p11, %s1209_s19, 1  ;;  %805 = vmatprep.mubr.msk.f32.mxu1 %vm1161_vm0, %v1159_v0  ;;  %v413_v7 = vld [vmem:[#allocation7 + $0x8] sm:$0xff]  ;;  %v845_v8 = vpack.c.bf16 %v264_v6, %v261_v4  ;;  %v416_v9 = vld [vmem:[#allocation7 + $0x20] sm:$0xff]  ;;  %v415_v11 = vld [vmem:[#allocation7 + $0x18] sm:$0xff] }
  0x6c   : > { %v412_v10 = vld [vmem:[#allocation7] sm:$0xff]  ;;  %844 = vmatprep.subr.bf16.mxu0 %v843_v5  ;;  %v850_v12 = vpack.c.bf16 %v416_v9, %v413_v7  ;;  %v419_v13 = vld [vmem:[#allocation7 + $0x38] sm:$0xff]  ;;  %v422_v14 = vld [vmem:[#allocation7 + $0x50] sm:$0xff]  ;;  %s254_s26 = scalar_lea.vmem [#allocation8], %s768_s25  ;;  %s1402_s28 = scalar_lea.hbm %s1450_s4, %s778_s6 }
  0x6d   : > { %s772_s21 = sshll.u32 %s256_s23, 3  ;;  %846 = vmatpush1.bf16.msra.mxu0 %v845_v8  ;;  %v852_v16 = vpack.c.bf16 %v415_v11, %v412_v10  ;;  %v854_v17 = vpack.c.bf16 %v422_v14, %v419_v13  ;;  %v418_v18 = vld [vmem:[#allocation7 + $0x30] sm:$0xff]  ;;  %v421_v19 = vld [vmem:[#allocation7 + $0x48] sm:$0xff]  ;;  %v428_v21 = vld [vmem:[#allocation7 + $0x80] sm:$0xff]  ;;  %s659_s10 = sshll.u32 %s254_s26, 4  ;;  %s1404_s10 = int_to_ptr.vmem [resolvable:$true] %s659_s10 }
  0x6e   : > { %s258_s5 = scalar_lea.vmem %s1446_s0, %s772_s21  ;;  %851 = vmatprep.subr.bf16.mxu0 %v850_v12  ;;  %v425_v20 = vld [vmem:[#allocation7 + $0x68] sm:$0xff]  ;;  %v856_v22 = vpack.c.bf16 %v421_v19, %v418_v18  ;;  %v424_v24 = vld [vmem:[#allocation7 + $0x60] sm:$0xff]  ;;  %v427_v25 = vld [vmem:[#allocation7 + $0x78] sm:$0xff]  ;;  %s646_s11 = scalar_lea.sflag [#allocation4], %s1357_s29 }
  0x6f   : > { %v260_v15 = vld [vmem:[%s258_s5] sm:$0xff]  ;;  %v858_v23 = vpack.c.bf16 %v428_v21, %v425_v20  ;;  %v431_v27 = vld [vmem:[#allocation7 + $0x98] sm:$0xff]  ;;  %v434_v28 = vld [vmem:[#allocation7 + $0xb0] sm:$0xff]  ;;  %v860_v31 = vpack.c.bf16 %v427_v25, %v424_v24  ;;  %s1082_s12 = scalar_lea.vmem %s1404_s10, 128  ;;  %p1464_p1 = scmp.ne.s32.totalorder %s1459_s13, 0 }
  0x70   : > { %773 = vmatmul.mubr.msk.f32.vlgmr.msra.gmra.mrb[0].mxu0 %vm267_vm1, %v260_v15  ;;  %v263_v26 = vld [vmem:[#allocation5 + $0x10] sm:$0xff]  ;;  %v266_v29 = vld [vmem:[#allocation5 + $0x28] sm:$0xff]  ;;  %v414_v32 = vld [vmem:[#allocation7 + $0x10] sm:$0xff]  ;;  %v862_v34 = vpack.c.bf16 %v434_v28, %v431_v27  ;;  %p1083_p0 = scmp.ne.s32.totalorder %s1404_s10, %s1082_s12  ;;  %s1162_s19 = smov [#allocation8]  }
  0x71   : > { %853 = vmatpush1.bf16.msra.mxu0 %v852_v16  ;;  %524 = vmatprep.mubr.f32.mxu0 %v1159_v0  ;;  %v848_v30 = vpack.c.bf16 %v266_v29, %v263_v26  ;;  %v417_v33 = vld [vmem:[#allocation7 + $0x28] sm:$0xff]  ;;  %v430_v35 = vld [vmem:[#allocation7 + $0x90] sm:$0xff]  ;;  %v440_v39 = vld [vmem:[#allocation7 + $0xe0] sm:$0xff]  ;;  %s1086_s25 = sshll.u32 %s1162_s19, 4  ;;  %s1087_s25 = int_to_ptr.vmem [resolvable:$false] %s1086_s25 }
  0x72   : > { %855 = vmatprep.subr.bf16.mxu0 %v854_v17  ;;  %v433_v36 = vld [vmem:[#allocation7 + $0xa8] sm:$0xff]  ;;  %v883_v38 = vpack.c.bf16 %v417_v33, %v414_v32  ;;  %v420_v40 = vld [vmem:[#allocation7 + $0x40] sm:$0xff]  ;;  %v423_v41 = vld [vmem:[#allocation7 + $0x58] sm:$0xff]  ;;  %p1084_p3 = pnand %p1083_p0, %p1464_p1  ;;  %s1088_s7 = scalar_lea.vmem %s1087_s25, 256 }
  0x73   : > { %v437_v37 = vld [vmem:[#allocation7 + $0xc8] sm:$0xff]  ;;  %849 = vmatpush3.bf16.msra.mxu1 %v848_v30  ;;  %v864_v42 = vpack.c.bf16 %v433_v36, %v430_v35  ;;  %v436_v44 = vld [vmem:[#allocation7 + $0xc0] sm:$0xff]  ;;  %v439_v45 = vld [vmem:[#allocation7 + $0xd8] sm:$0xff]  ;;  %v886_v47 = vpack.c.bf16 %v423_v41, %v420_v40  ;;  %p1089_p9 = scmp.lt.s32.totalorder %s1404_s10, %s1087_s25  ;;  %p1090_p12 = scmp.lt.s32.totalorder %s1088_s7, %s1082_s12 }
  0x74   : > { %882 = vmatprep.subr.bf16.mxu1 %v1160_v1  ;;  %v866_v43 = vpack.c.bf16 %v440_v39, %v437_v37  ;;  %v443_v46 = vld [vmem:[#allocation7 + $0xf8] sm:$0xff]  ;;  %v446_v48 = vld [vmem:[#allocation7 + $0x110] sm:$0xff]  ;;  %v429_v50 = vld [vmem:[#allocation7 + $0x88] sm:$0xff]  ;;  %v868_v51 = vpack.c.bf16 %v439_v45, %v436_v44  ;;  %p1085_p7 = pneg %p1084_p3 }
  0x75   : > { %857 = vmatpush1.bf16.msra.mxu0 %v856_v22  ;;  %v426_v49 = vld [vmem:[#allocation7 + $0x70] sm:$0xff]  ;;  %v870_v52 = vpack.c.bf16 %v446_v48, %v443_v46  ;;  %v445_v54 = vld [vmem:[#allocation7 + $0x108] sm:$0xff]  ;;  %v452_v57 = vld [vmem:[#allocation7 + $0x140] sm:$0xff]  ;;  %p1091_p2 = por %p1090_p12, %p1089_p9 }
  0x76   : > { %859 = vmatprep.subr.bf16.mxu0 %v858_v23  ;;  %806 = vmatmul.mubr.msk.f32.vlgmr.msra.gmra.mrb[0].mxu1 %vm267_vm1, %v260_v15  ;;  %v442_v53 = vld [vmem:[#allocation7 + $0xf0] sm:$0xff]  ;;  %v449_v55 = vld [vmem:[#allocation7 + $0x128] sm:$0xff]  ;;  %v889_v56 = vpack.c.bf16 %v429_v50, %v426_v49  ;;  %v432_v58 = vld [vmem:[#allocation7 + $0xa0] sm:$0xff] }
  0x77   : > { %884 = vmatpush3.bf16.msra.mxu1 %v883_v38  ;;  %840 = vmatprep.mubr.msk.f32.mxu1 %vm1161_vm0, %v1159_v0  ;;  %v435_v59 = vld [vmem:[#allocation7 + $0xb8] sm:$0xff]  ;;  %v872_v60 = vpack.c.bf16 %v445_v54, %v442_v53  ;;  %v874_v61 = vpack.c.bf16 %v452_v57, %v449_v55  ;;  %v448_v62 = vld [vmem:[#allocation7 + $0x120] sm:$0xff]  ;;  %v458_v3 = vld [vmem:[#allocation7 + $0x170] sm:$0xff]  ;;  %p1092_p13 = pnand %p1091_p2, %p1085_p7 }
  0x78   : > { %885 = vmatprep.subr.bf16.mxu1 %v1160_v1  ;;  %v451_v63 = vld [vmem:[#allocation7 + $0x138] sm:$0xff]  ;;  %v892_v2 = vpack.c.bf16 %v435_v59, %v432_v58  ;;  %v438_v4 = vld [vmem:[#allocation7 + $0xd0] sm:$0xff]  ;;  %v441_v5 = vld [vmem:[#allocation7 + $0xe8] sm:$0xff] }
  0x79   : > { %861 = vmatpush1.bf16.msra.mxu0 %v860_v31  ;;  %v455_v0 = vld [vmem:[#allocation7 + $0x158] sm:$0xff]  ;;  %v876_v6 = vpack.c.bf16 %v451_v63, %v448_v62  ;;  %v454_v8 = vld [vmem:[#allocation7 + $0x150] sm:$0xff]  ;;  %v457_v9 = vld [vmem:[#allocation7 + $0x168] sm:$0xff]  ;;  %v895_v10 = vpack.c.bf16 %v441_v5, %v438_v4 }
  0x7a   : > { %863 = vmatprep.subr.bf16.mxu0 %v862_v34  ;;  %v878_v7 = vpack.c.bf16 %v458_v3, %v455_v0  ;;  %v444_v11 = vld [vmem:[#allocation7 + $0x100] sm:$0xff]  ;;  %v447_v12 = vld [vmem:[#allocation7 + $0x118] sm:$0xff]  ;;  %v880_v13 = vpack.c.bf16 %v457_v9, %v454_v8  ;;  %v450_v15 = vld [vmem:[#allocation7 + $0x130] sm:$0xff] }
  0x7b   : > { %887 = vmatpush3.bf16.msra.mxu1 %v886_v47  ;;  %v898_v14 = vpack.c.bf16 %v447_v12, %v444_v11  ;;  %v453_v16 = vld [vmem:[#allocation7 + $0x148] sm:$0xff]  ;;  %v456_v19 = vld [vmem:[#allocation7 + $0x160] sm:$0xff]  ;;  %v459_v20 = vld [vmem:[#allocation7 + $0x178] sm:$0xff] }
  0x7c   : > { %888 = vmatprep.subr.bf16.mxu1 %v1160_v1  ;;  %v259_v17 = vld [vmem:[%s1363_s8] sm:$0xff]  ;;  %v901_v18 = vpack.c.bf16 %v453_v16, %v450_v15  ;;  %v904_v21 = vpack.c.bf16 %v459_v20, %v456_v19 }
  0x7d   : > { %865 = vmatpush1.bf16.msra.mxu0 %v864_v42 }
  0x7e   : > { %867 = vmatprep.subr.bf16.mxu0 %v866_v43 }
  0x7f   : > { %890 = vmatpush3.bf16.msra.mxu1 %v889_v56 }
  0x80   : > { %891 = vmatprep.subr.bf16.mxu1 %v1160_v1 }
  0x81   : > { %869 = vmatpush1.bf16.msra.mxu0 %v868_v51 }
  0x82   : > { %871 = vmatprep.subr.bf16.mxu0 %v870_v52 }
  0x83   : > { %893 = vmatpush3.bf16.msra.mxu1 %v892_v2 }
  0x84   : > { %894 = vmatprep.subr.bf16.mxu1 %v1160_v1 }
  0x85   : > { %873 = vmatpush1.bf16.msra.mxu0 %v872_v60 }
  0x86   : > { %875 = vmatprep.subr.bf16.mxu0 %v874_v61 }
  0x87   : > { %896 = vmatpush3.bf16.msra.mxu1 %v895_v10 }
  0x88   : > { %897 = vmatprep.subr.bf16.mxu1 %v1160_v1 }
  0x89   : > { %877 = vmatpush1.bf16.msra.mxu0 %v876_v6 }
  0x8a   : > { %879 = vmatprep.subr.bf16.mxu0 %v878_v7 }
  0x8b   : > { %899 = vmatpush3.bf16.msra.mxu1 %v898_v14 }
  0x8c   : > { %900 = vmatprep.subr.bf16.mxu1 %v1160_v1 }
  0x8d   : > { %881 = vmatpush1.bf16.msra.mxu0 %v880_v13 }
  0x8f   : > { %902 = vmatpush3.bf16.msra.mxu1 %v901_v18 }
  0x90   : > { %525 = vmatmul.mubr.f32.vlgmr.msra.gmra.mrb[2].mxu0 %v259_v17  ;;  %903 = vmatprep.subr.bf16.mxu1 %v1160_v1 }
  0x93   : > { %905 = vmatpush3.bf16.msra.mxu1 %v904_v21 }
  0x96   : > { %841 = vmatmul.mubr.f32.vlgmr.msra.gmra.mrb[2].mxu1 %v259_v17 }
 0x143   : > { %v337_v22 = vpop.f32.mrb[0].mxu0 }
 0x144   : > { %v339_v23 = vpop.f32.mrb[1].mxu0 }
 0x149   : > { %v408_v24 = vpop.f32.mrb[0].mxu1 }
 0x14a   : > { %v807_v25 = vpop.f32.mrb[1].mxu1 }
 0x163   : > { %v526_v26 = vpop.f32.mrb[2].mxu0 }
 0x164   : > { %v601_v27 = vmul.f32 %v526_v26, %v337_v22  ;;  %v528_v28 = vpop.f32.mrb[3].mxu0 }
 0x165   : > { %v608_v29 = vmul.f32 %v528_v28, %v339_v23 }
 0x166   : > { %v775_v30 = vmul.f32 -1.442695, %v601_v27 }
 0x167   : > { %v776_v42 = vmul.f32 -1.442695, %v608_v29 }
 0x168   : > { %978 = vpow2.f32 %v775_v30 }
 0x169   : > { %v597_v31 = vpop.f32.mrb[2].mxu1 }
 0x16a   : > { %v842_v32 = vpop.f32.mrb[3].mxu1 }
 0x172   : > { %v979_v33 = vpop.eup %978 }
 0x173   : > { %v605_v34 = vadd.f32 1.0, %v979_v33 }
 0x175   : > { %980 = vrcp.f32 %v605_v34 }
 0x17f   : > { %v981_v35 = vpop.eup %980 }
 0x180   : > { %v615_v36 = vmul.f32 %v981_v35, %v597_v31 }
 0x182   : > { %v616_v1 = vmul.f32 %v615_v36, %v408_v24 }
 0x184   : > { %v620_v37 = vand.u32 2147483647, %v616_v1  ;;  %v617_v49 = vmax.f32 %v616_v1, 0.0  ;;  %vm618_vm3 = vcmp.ne.f32.partialorder %v616_v1, %v616_v1 }
 0x186   : > { %v621_v38 = vsub.f32 0.0, %v620_v37 }
 0x188   : > { %v622_v39 = vmul.f32 1.442695, %v621_v38 }
 0x18a   : > { %982 = vpow2.f32 %v622_v39 }
 0x194   : > { %v983_v40 = vpop.eup %982 }
 0x195   : > { %v624_v41 = vadd.f32 1.0, %v983_v40  ;;  %v627_v43 = vmul.f32 -0.5, %v983_v40  ;;  %v630_v45 = vand.u32 2147483647, %v983_v40 }
 0x197   : > { %984 = vlog2.f32 %v624_v41  ;;  %v628_v44 = vadd.f32 1.0, %v627_v43  ;;  %vm631_vm2 = vcmp.lt.f32.partialorder %v630_v45, 0.0004427343 }
 0x198   : > { %986 = vpow2.f32 %v776_v42 }
 0x199   : > { %v629_v48 = vmul.f32 %v983_v40, %v628_v44  ;;  %988 = vlog2.f32 %v259_v17 }
 0x1a1   : > { %v985_v46 = vpop.eup %984 }
 0x1a2   : > { %v626_v47 = vmul.f32 0.6931472, %v985_v46  ;;  %v987_v51 = vpop.eup %986 }
 0x1a3   : > { %v612_v54 = vadd.f32 1.0, %v987_v51  ;;  %v989_v55 = vpop.eup %988 }
 0x1a4   : > { %v632_v50 = vsel %vm631_vm2, %v629_v48, %v626_v47  ;;  %v638_v56 = vmul.f32 0.6931472, %v989_v55 }
 0x1a5   : > { %v633_v52 = vadd.f32 %v632_v50, %v617_v49 }
 0x1a7   : > { %v634_v53 = vsel %vm618_vm3, %v616_v1, %v633_v52 }
 0x1a8   : > { %990 = vlog2.f32 %v634_v53 }
 0x1a9   : > { %992 = vrcp.f32 %v612_v54 }
 0x1b2   : > { %v991_v57 = vpop.eup %990 }
 0x1b3   : > { %v636_v58 = vmul.f32 0.6931472, %v991_v57  ;;  %v993_v60 = vpop.eup %992 }
 0x1b5   : > { %v639_v59 = vsub.f32 %v638_v56, %v636_v58 }
 0x1b7   : > { %v640_v61 = vmul.f32 %v993_v60, %v639_v59 }
 0x1b9   : > { %v641_v62 = vadd.f32 %v640_v61, %v636_v58 }
 0x1bb   : > { %v642_v63 = vmul.f32 1.442695, %v641_v62 }
 0x1bd   : > { %994 = vpow2.f32 %v642_v63 }
 0x1c7   : > { %v995_v0 = vpop.eup %994 }
 0x1c8   : > { %644 = vst [vmem:[%s254_s26] sm:$0xff] %v995_v0 }
 0x1c9   : > { %1095 = shalt.err (!%p1092_p13)
}
 0x1ca   : > { %s1096_s29 = scalar_lea.hbm %s1402_s28, 128  ;;  %s1100_s21 = scalar_lea.hbm %s1450_s4, 256 }
 0x1cb   : > { %p1097_p6 = scmp.ne.s32.totalorder %s1402_s28, %s1096_s29  ;;  %p1101_p5 = scmp.lt.u32.totalorder %s1402_s28, %s1450_s4 }
 0x1cc   : > { %p1102_p8 = scmp.lt.u32.totalorder %s1100_s21, %s1096_s29  ;;  %p1104_p0 = scmp.lt.u32.totalorder %s1096_s29, %s1402_s28 }
 0x1cd   : > { %p1098_p10 = pnand %p1097_p6, %p1464_p1 }
 0x1ce   : > { %p1103_p11 = por %p1102_p8, %p1101_p5 }
 0x1cf   : > { %p1099_p4 = pneg %p1098_p10 }
 0x1d0   : > { %p1105_p3 = por %p1104_p0, %p1103_p11 }
 0x1d2   : > { %p1106_p7 = pnand %p1105_p3, %p1099_p4 }
 0x1d4   : > { %1109 = shalt.err (!%p1106_p7)
}
 0x1d5   : > { %916 = dma.vmem_to_hbm [thread:$0]  (%p1464_p1), %s1404_s10, 128, %s1402_s28, %s646_s11  }
 0x1d6 PF: > { %s671_s5 = sand.u32 1, %s1140_s15   ;;  %p1465_p9 = scmp.ne.s32.totalorder %s1455_s22, 0 }
 0x1d7   : > { %p1466_p12 = scmp.ge.s32.totalorder %s1152_s18, 2  ;;  %s672_s6 = scalar_lea.sflag [#allocation4], %s671_s5 }
 0x1d9   : > { %p930_p2 = pnand %p1466_p12, %p1465_p9 }
 0x1db   : > { %1135 = dma.done.wait (!%p930_p2), %s672_s6, 128  }
 0x1dc   : > { %1137 = vsyncadd (!%p930_p2), %s672_s6, 4294967168  ;;  %p18_p13 = scmp.ge.s32.totalorder %s1298_s9, 4   ;;  %s1467_s15 = smov %s1144_s16 }
 0x1dd   : > { %s1468_s16 = smov %s1148_s17  ;;  %s1469_s17 = smov %s1314_s14 }
 0x1de   : > { %s1470_s18 = smov %s1298_s9  ;;  %20 = sbr.rel (!%p18_p13) target bundleno = 6 (0x6), region = 92 }
 0x1e5   :  { %677 = vsyncpa [#allocation3], 1 }
 0x1e6   :  { %679 = vsyncpa [#allocation3 + $0x1], 1 }
 0x1e7   :  { %680 = vsyncpa [#allocation6], 1 }
 0x1e8   :  { %681 = vsyncpa [#allocation4], 1 }
 0x1e9   :  { %683 = vsyncpa [#allocation4 + $0x1], 1 }

</bundles_post_ra>
